<compile_context>
chip_gen: v7x
topology: tpu7x:2x2x1
jax: 0.10.0
libtpu: 0.0.40
codegen_flags: <defaults>
</compile_context>

<pallas_src>
import jax
import jax.numpy as jnp
from jax.experimental import pallas as pl
from jax.experimental.pallas import tpu as pltpu

LANES = 128


# ----------------------------------------------------------------------------
# Parameter inventory (mirrors the PyTorch module's parameters)
# ----------------------------------------------------------------------------
def init_params(key, *, embed_size, heads, hidden_dim, vocab_size,
                forward_expansion, img_channels):
    E, H, FE = embed_size, hidden_dim, forward_expansion
    shapes = {}

    def lin(prefix, din, dout, bias=True):
        shapes[prefix + "_w"] = (din, dout)
        if bias:
            shapes[prefix + "_b"] = (1, dout)

    for blk in ("enc", "dec"):
        lin(blk + "_fc", E, E)
        for t in ("v", "k", "q", "o"):
            lin(f"{blk}_att_{t}", E, E)
        lin(blk + "_ff1", E, FE * E)
        lin(blk + "_ff2", FE * E, E)
        for n in ("n1", "n2"):
            shapes[f"{blk}_{n}_g"] = (1, E)
            shapes[f"{blk}_{n}_b"] = (1, E)
    shapes["fc1_w"] = (E, E)          # bias=False
    shapes["fc2_w"] = (E, 4)          # bias=False

    # FeatureExtractor
    shapes["cnn_w"] = (img_channels, E)   # TODO(synk): stand-in for resnet18
    shapes["cnn_b"] = (1, E)
    shapes["emb_table"] = (vocab_size, E)
    # LSTM weights in PyTorch gate order [i, f, g, o] along the output columns.
    shapes["wih_f"] = (E, 4 * H); shapes["whh_f"] = (H, 4 * H)
    shapes["bih_f"] = (1, 4 * H); shapes["bhh_f"] = (1, 4 * H)
    shapes["wih_b"] = (E, 4 * H); shapes["whh_b"] = (H, 4 * H)
    shapes["bih_b"] = (1, 4 * H); shapes["bhh_b"] = (1, 4 * H)
    shapes["sp_fc_w"] = (2 * H, 1); shapes["sp_fc_b"] = (1, 1)

    params = {}
    keys = jax.random.split(key, len(shapes))
    for k, (name, shp) in zip(keys, sorted(shapes.items())):
        if name.endswith("_g"):                                  # LayerNorm gamma
            params[name] = jnp.ones(shp, jnp.float32)
        elif name.endswith("_b") and ("_n1_" in name or "_n2_" in name):
            params[name] = jnp.zeros(shp, jnp.float32)           # LayerNorm beta
        else:
            params[name] = 0.1 * jax.random.normal(k, shp, dtype=jnp.float32)
    # nn.Embedding(padding_idx=0): row 0 is zeros
    params["emb_table"] = params["emb_table"].at[0].set(0.0)
    return params


# ----------------------------------------------------------------------------
# Host-side packing: fold affine chains, reorder LSTM gates, pad everything to
# lane-dense 128-wide bands, concatenate into TWO slabs (matrix + vector).
# Runs once at build time.
# ----------------------------------------------------------------------------
def pack_params(params, *, embed_size, hidden_dim, heads, img_channels,
                forward_expansion):
    E, H, C = embed_size, hidden_dim, img_channels
    f32 = jnp.float32

    # ----- LSTM gate-column reorder + input/recurrent split --------------------
    # Global gate-column layout of the per-step (T, 8H) gate tensor:
    #   [0:3H)  fwd i,f,o   [3H:6H) bwd i,f,o   [6H:7H) fwd g   [7H:8H) bwd g
    # -> one contiguous sigmoid over [0:6H) and one tanh over [6H:8H) per step.
    def place_gate_cols(dst, src, row0, direction):
        nrows = src.shape[0]
        i_, f_, g_, o_ = (src[:, 0:H], src[:, H:2 * H],
                          src[:, 2 * H:3 * H], src[:, 3 * H:4 * H])
        base = 0 if direction == "f" else 3 * H
        gcol = 6 * H if direction == "f" else 7 * H
        dst = dst.at[row0:row0 + nrows, base:base + H].set(i_)
        dst = dst.at[row0:row0 + nrows, base + H:base + 2 * H].set(f_)
        dst = dst.at[row0:row0 + nrows, base + 2 * H:base + 3 * H].set(o_)
        dst = dst.at[row0:row0 + nrows, gcol:gcol + H].set(g_)
        return dst

    wxF = place_gate_cols(jnp.zeros((LANES, LANES), f32), params["wih_f"], 0, "f")
    wxB = place_gate_cols(jnp.zeros((LANES, LANES), f32), params["wih_b"], 0, "b")
    whh = place_gate_cols(jnp.zeros((2 * H, LANES), f32), params["whh_f"], 0, "f")
    whh = place_gate_cols(whh, params["whh_b"], H, "b")
    bxF = place_gate_cols(jnp.zeros((1, LANES), f32),
                          params["bih_f"] + params["bhh_f"], 0, "f")
    bxB = place_gate_cols(jnp.zeros((1, LANES), f32),
                          params["bih_b"] + params["bhh_b"], 0, "b")

    # ----- fold the purely-affine SelfAttention / head chains ------------------
    # Reference softmax rows (over head_dim, masked_fill = -1e20, never -inf)
    # each sum to 1, so einsum('nql,nhd->nhd') == heads * values_proj(v).
    hs = float(heads)

    def fold(blk):
        Wv, bv = params[f"{blk}_att_v_w"], params[f"{blk}_att_v_b"]
        Wo, bo = params[f"{blk}_att_o_w"], params[f"{blk}_att_o_b"]
        return hs * (Wv @ Wo), hs * (bv @ Wo) + bo, hs * Wv, hs * bv

    enc_fold_w, enc_fold_b, enc_vs_w, enc_vs_b = fold("enc")
    dec_fold_w, dec_fold_b, _, _ = fold("dec")
    head_w = params["fc1_w"] @ params["fc2_w"]            # (E, 4), both bias-free

    # ----- weight slab: 128-lane bands, 8-aligned row offsets ------------------
    def band(arr, read_rows):
        r, c = arr.shape
        rows_p = -(-max(r, read_rows) // 8) * 8
        return jnp.zeros((rows_p, LANES), f32).at[:r, :c].set(arr.astype(f32)), rows_p

    mats = [
        ("wxF", wxF, LANES), ("wxB", wxB, LANES), ("whh", whh, 2 * H),
        ("cnn_w", params["cnn_w"], C),
        ("enc_fc_w", params["enc_fc_w"], LANES),
        ("enc_att_fold_w", enc_fold_w, LANES),
        ("enc_att_vs_w", enc_vs_w, LANES),
        ("enc_ff1_w", params["enc_ff1_w"], LANES),
        ("enc_ff2_w", params["enc_ff2_w"], LANES),
        ("dec_fc_w", params["dec_fc_w"], LANES),
        ("dec_att_fold_w", dec_fold_w, LANES),
        ("dec_ff1_w", params["dec_ff1_w"], LANES),
        ("dec_ff2_w", params["dec_ff2_w"], LANES),
        ("head_w", head_w, LANES),
    ]
    layout_w, w_bands, off = {}, [], 0
    for name, arr, read_rows in mats:
        b, rows_p = band(arr, read_rows)
        layout_w[name] = (off, read_rows)
        w_bands.append(b)
        off += rows_p
    wslab = jnp.concatenate(w_bands, axis=0)

    # ----- vector slab: one 128-lane row per bias / gamma / beta ---------------
    vecs = [
        ("bxF", bxF), ("bxB", bxB),
        ("cnn_b", params["cnn_b"]),
        ("sp_fc_wrow", params["sp_fc_w"].T),   # (1, 2H); sp_fc_b cancels in softmax
        ("enc_fc_b", params["enc_fc_b"]),
        ("enc_att_fold_b", enc_fold_b),
        ("enc_att_vs_b", enc_vs_b),
        ("enc_n1_g", params["enc_n1_g"]), ("enc_n1_b", params["enc_n1_b"]),
        ("enc_n2_g", params["enc_n2_g"]), ("enc_n2_b", params["enc_n2_b"]),
        ("enc_ff1_b", params["enc_ff1_b"]), ("enc_ff2_b", params["enc_ff2_b"]),
        ("dec_fc_b", params["dec_fc_b"]),
        ("dec_att_fold_b", dec_fold_b),
        ("dec_n1_g", params["dec_n1_g"]), ("dec_n1_b", params["dec_n1_b"]),
        ("dec_n2_g", params["dec_n2_g"]), ("dec_n2_b", params["dec_n2_b"]),
        ("dec_ff1_b", params["dec_ff1_b"]), ("dec_ff2_b", params["dec_ff2_b"]),
    ]
    layout_v, v_rows = {}, []
    for i, (name, arr) in enumerate(vecs):
        arr = arr.reshape(1, -1).astype(f32)
        layout_v[name] = i
        v_rows.append(jnp.zeros((1, LANES), f32).at[:, :arr.shape[1]].set(arr))
    v_rows += [jnp.zeros((1, LANES), f32)] * ((-len(v_rows)) % 8)
    vslab = jnp.concatenate(v_rows, axis=0)

    # Embedding table padded to 128 lanes (padding_idx row already zero) so the
    # gathered embeddings feed the kernel as unmasked full vregs.
    emb_pad = jnp.zeros((params["emb_table"].shape[0], LANES), f32)
    emb_pad = emb_pad.at[:, :E].set(params["emb_table"])

    return wslab, vslab, emb_pad, layout_w, layout_v


# ----------------------------------------------------------------------------
# The single fused kernel
# ----------------------------------------------------------------------------
def make_fused_kernel(layout_w, layout_v, *, N, T, E, H, C, HW):
    inv_E = 1.0 / float(E)

    def kernel(img_ref, emb_ref, w_ref, v_ref, out_ref, hh_scr):
        def W(name):
            r0, rr = layout_w[name]
            return w_ref[r0:r0 + rr, :]

        def V(name):
            i = layout_v[name]
            return v_ref[i:i + 1, :]

        def mm(x, w):
            return jnp.dot(x, w, preferred_element_type=jnp.float32)

        def layer_norm(x, g, b):
            # Activations are zero-padded to 128 lanes beyond E; statistics use
            # the true width E.  gamma/beta are zero beyond E, so padded lanes
            # stay exactly zero through the whole network.
            mu = jnp.sum(x, axis=-1, keepdims=True) * inv_E
            var = jnp.sum(x * x, axis=-1, keepdims=True) * inv_E - mu * mu
            return (x - mu) * jax.lax.rsqrt(var + 1e-5) * g + b

        def feed_forward(x, blk):
            h1 = jnp.maximum(mm(x, W(blk + "_ff1_w")) + V(blk + "_ff1_b"), 0.0)
            return mm(h1, W(blk + "_ff2_w")) + V(blk + "_ff2_b")

        # ---------------- CNN stand-in: per-channel GAP + Linear ----------------
        # TODO(synk): pretrained resnet18 + torchvision preprocess is not
        # reproducible without a checkpoint; deterministic stand-in.
        cnn_off, _ = layout_w["cnn_w"]
        imm = V("cnn_b")                                         # (1,128), broadcasts
        for c in range(C):
            pooled_c = jnp.mean(img_ref[:, c * HW:(c + 1) * HW],
                                axis=-1, keepdims=True)          # (N, 1)
            imm = imm + pooled_c * w_ref[cnn_off + c:cnn_off + c + 1, :]
        # imm: (N, 128), zero beyond E.

        # -------- SoftParser: bi-LSTM (time axis = N, batch = T) + pooling ------
        emb3 = emb_ref[...]                                      # (N, T, 128)
        emb_flat = emb3.reshape(N * T, LANES)                    # merge leading dims
        # x->gate projections hoisted out of the recurrence (one matmul each).
        xgF = mm(emb_flat, W("wxF")) + V("bxF")                  # (N*T, 8H) fwd cols
        xgB = mm(emb_flat, W("wxB")) + V("bxB")                  # (N*T, 8H) bwd cols
        whh = W("whh")                                           # (2H, 8H)

        h_cat = jnp.zeros((T, 2 * H), jnp.float32)               # [h_f | h_b]
        c_f = jnp.zeros((T, H), jnp.float32)
        c_b = jnp.zeros((T, H), jnp.float32)

        for step in range(N):
            tf, tb = step, N - 1 - step
            rec = mm(h_cat, whh) if step else 0.0                # 1 MXU push / step
            gates = rec + xgF[tf * T:(tf + 1) * T, :] + xgB[tb * T:(tb + 1) * T, :]
            ifo = jax.nn.sigmoid(gates[:, 0:6 * H])              # 1 EUP push, both dirs
            gg = jnp.tanh(gates[:, 6 * H:8 * H])                 # 1 EUP push, both dirs
            c_f = ifo[:, H:2 * H] * c_f + ifo[:, 0:H] * gg[:, 0:H]
            c_b = ifo[:, 4 * H:5 * H] * c_b + ifo[:, 3 * H:4 * H] * gg[:, H:2 * H]
            h_f = ifo[:, 2 * H:3 * H] * jnp.tanh(c_f)
            h_b = ifo[:, 5 * H:6 * H] * jnp.tanh(c_b)
            hh_scr[tf, :, 0:H] = h_f                             # lstm_out[:, :, :H]
            hh_scr[tb, :, H:2 * H] = h_b                         # lstm_out[:, :, H:]
            h_cat = jnp.concatenate([h_f, h_b], axis=-1)

        # Batched scores + softmax over T + pooled tokens (single chains).
        hh = hh_scr[...]                                         # (N, T, 2H)
        sp_i = layout_v["sp_fc_wrow"]
        sp_w = v_ref[sp_i:sp_i + 1, 0:2 * H]                     # (1, 2H)
        scores = jnp.sum(hh * sp_w[None], axis=-1, keepdims=True)  # (N, T, 1)
        m = jnp.max(scores, axis=1, keepdims=True)
        e = jnp.exp(scores - m)
        wgt = e * pl.reciprocal(jnp.sum(e, axis=1, keepdims=True), approx=True)
        text = jnp.sum(emb3 * wgt, axis=1)                       # (N, 128), zero > E

        # ==================== Encoder_SelfAtt_transBlock ====================
        both = jnp.concatenate([text, imm], axis=0)              # (2N, 128)
        q_both = mm(both, W("enc_fc_w")) + V("enc_fc_b")         # shared fc, 1 matmul
        q_text, q_imm = q_both[:N], q_both[N:]
        # Folded attention (flag=True): values-proj * heads then fc_out.
        att_both = mm(q_both, W("enc_att_fold_w")) + V("enc_att_fold_b")
        att_text, att_imm = att_both[:N], att_both[N:]

        x = layer_norm(att_text + q_text, V("enc_n1_g"), V("enc_n1_b"))
        out_text = layer_norm(feed_forward(x, "enc") + x,
                              V("enc_n2_g"), V("enc_n2_b"))

        # flag=False path: heads * values-proj only.
        qv = mm(out_text, W("enc_att_vs_w")) + V("enc_att_vs_b")
        q_imm2 = qv + q_imm
        y = layer_norm(att_imm + q_imm2, V("enc_n1_g"), V("enc_n1_b"))
        out_imm = layer_norm(feed_forward(y, "enc") + y,
                             V("enc_n2_g"), V("enc_n2_b"))

        # ==================== Decoder ====================
        d_both = mm(jnp.concatenate([out_text, out_imm], axis=0),
                    W("dec_fc_w")) + V("dec_fc_b")               # (2N, 128)
        d_text = d_both[:N]
        att2 = mm(d_both, W("dec_att_fold_w")) + V("dec_att_fold_b")
        att_t, att_i = att2[:N], att2[N:]
        dx = layer_norm(att_t + d_text, V("dec_n1_g"), V("dec_n1_b"))
        dy = layer_norm(att_i + dx, V("dec_n1_g"), V("dec_n1_b"))
        final = layer_norm(feed_forward(dy, "dec") + dy,
                           V("dec_n2_g"), V("dec_n2_b"))

        # ==================== head: relu(x @ (fc1 @ fc2)) ====================
        out_ref[...] = jnp.maximum(mm(final, W("head_w")), 0.0)  # (N, 128) lane-dense

    return kernel


# ----------------------------------------------------------------------------
# Build-once forward (slabs packed & cached here; forward is jitted)
# ----------------------------------------------------------------------------
def make_forward(params, *, embed_size, heads, hidden_dim, img_channels,
                 img_hw, batch, seq_len, forward_expansion):
    E, H, C = embed_size, hidden_dim, img_channels
    N, T, HW = batch, seq_len, img_hw
    assert E <= LANES and 8 * H <= LANES and forward_expansion * E <= LANES

    wslab, vslab, emb_pad, layout_w, layout_v = pack_params(
        params, embed_size=E, hidden_dim=H, heads=heads,
        img_channels=C, forward_expansion=forward_expansion)

    kernel = make_fused_kernel(layout_w, layout_v, N=N, T=T, E=E, H=H, C=C, HW=HW)

    vmem = pl.BlockSpec(memory_space=pltpu.MemorySpace.VMEM)
    # Single grid-less call: the whole problem is < 1 MiB of VMEM, far below the
    # limit on v5e/v6e/v7x.  (If N / image size is scaled up, add a grid over N
    # with dimension_semantics=("parallel",) to use both v7x TensorCores and
    # re-budget against v7x's 64 MiB VMEM.)
    call = pl.pallas_call(
        kernel,
        out_shape=jax.ShapeDtypeStruct((N, LANES), jnp.float32),
        in_specs=[vmem] * 4,
        out_specs=vmem,
        scratch_shapes=[pltpu.VMEM((N, T, 2 * H), jnp.float32)],
    )

    @jax.jit
    def forward(image, caption, mask=None):
        # `mask` is kept for interface parity with the PyTorch module, but the
        # reference attention output is provably independent of it (masked_fill
        # uses -1e20, every per-head softmax row still sums to 1), so it never
        # reaches the kernel.
        del mask
        img2 = image.reshape(N, C * HW).astype(jnp.float32)      # 2-D, tile-aligned
        embedded = emb_pad[caption]                              # (N,T,128) gather (glue)
        out128 = call(img2, embedded, wslab, vslab)
        return out128[:, :4]

    return forward


# ----------------------------------------------------------------------------
if __name__ == "__main__":
    EMBED_SIZE = 32
    HEADS = 4
    HIDDEN_DIM = 16
    VOCAB_SIZE = 50
    FORWARD_EXPANSION = 2
    N = 4            # batch
    T = 8            # caption length
    C, HIMG, WIMG = 3, 16, 16

    key = jax.random.PRNGKey(0)
    k_param, k_img, k_cap, k_mask = jax.random.split(key, 4)

    params = init_params(k_param, embed_size=EMBED_SIZE, heads=HEADS,
                         hidden_dim=HIDDEN_DIM, vocab_size=VOCAB_SIZE,
                         forward_expansion=FORWARD_EXPANSION, img_channels=C)

    image = jax.random.normal(k_img, (N, C, HIMG, WIMG), dtype=jnp.float32)
    caption = jax.random.randint(k_cap, (N, T), 0, VOCAB_SIZE, dtype=jnp.int32)
    mask = jax.random.bernoulli(
        k_mask, 0.9, (N, HEADS, EMBED_SIZE // HEADS)).astype(jnp.float32)

    forward = make_forward(params, embed_size=EMBED_SIZE, heads=HEADS,
                           hidden_dim=HIDDEN_DIM, img_channels=C,
                           img_hw=HIMG * WIMG, batch=N, seq_len=T,
                           forward_expansion=FORWARD_EXPANSION)

    out = forward(image, caption, mask)
    out = jax.block_until_ready(out)
    assert out.shape == (N, 4) and out.dtype == jnp.float32
    assert bool(jnp.all(jnp.isfinite(out)))
    print("KERNEL_OK")
</pallas_src>

<mosaic_0001>
module attributes {stable_mosaic.version = 11 : i64} {
  func.func @kernel(%arg0: memref<4x768xf32, #tpu.memory_space<vmem>>, %arg1: memref<4x8x128xf32, #tpu.memory_space<vmem>>, %arg2: memref<1576x128xf32, #tpu.memory_space<vmem>>, %arg3: memref<24x128xf32, #tpu.memory_space<vmem>>, %arg4: memref<4x128xf32, #tpu.memory_space<vmem>>, %arg5: memref<4x8x32xf32, #tpu.memory_space<vmem>>) attributes {dimension_semantics = [], scalar_prefetch = 0 : i64, scratch_operands = 1 : i64, tpu.core_type = #tpu.core_type<tc>} {
    %c2 = arith.constant 2 : index
    %c0 = arith.constant 0 : index
    %0 = vector.load %arg3[%c2, %c0] : memref<24x128xf32, #tpu.memory_space<vmem>>, vector<1x128xf32>
    %c0_0 = arith.constant 0 : index
    %c0_1 = arith.constant 0 : index
    %1 = vector.load %arg0[%c0_0, %c0_1] : memref<4x768xf32, #tpu.memory_space<vmem>>, vector<4x256xf32>
    %cst = arith.constant dense<0.000000e+00> : vector<4xf32>
    %2 = vector.multi_reduction <add>, %1, %cst [1] : vector<4x256xf32> to vector<4xf32>
    %3 = vector.shape_cast %2 : vector<4xf32> to vector<4x1xf32>
    %cst_2 = arith.constant 2.560000e+02 : f32
    %4 = vector.broadcast %cst_2 : f32 to vector<4x1xf32>
    %5 = arith.divf %3, %4 : vector<4x1xf32>
    %c288 = arith.constant 288 : index
    %c0_3 = arith.constant 0 : index
    %6 = vector.load %arg2[%c288, %c0_3] : memref<1576x128xf32, #tpu.memory_space<vmem>>, vector<1x128xf32>
    %7 = vector.broadcast %5 : vector<4x1xf32> to vector<4x128xf32>
    %8 = vector.broadcast %6 : vector<1x128xf32> to vector<4x128xf32>
    %9 = arith.mulf %7, %8 : vector<4x128xf32>
    %10 = vector.broadcast %0 : vector<1x128xf32> to vector<4x128xf32>
    %11 = arith.addf %10, %9 : vector<4x128xf32>
    %c0_4 = arith.constant 0 : index
    %c256 = arith.constant 256 : index
    %12 = vector.load %arg0[%c0_4, %c256] : memref<4x768xf32, #tpu.memory_space<vmem>>, vector<4x256xf32>
    %cst_5 = arith.constant dense<0.000000e+00> : vector<4xf32>
    %13 = vector.multi_reduction <add>, %12, %cst_5 [1] : vector<4x256xf32> to vector<4xf32>
    %14 = vector.shape_cast %13 : vector<4xf32> to vector<4x1xf32>
    %cst_6 = arith.constant 2.560000e+02 : f32
    %15 = vector.broadcast %cst_6 : f32 to vector<4x1xf32>
    %16 = arith.divf %14, %15 : vector<4x1xf32>
    %c289 = arith.constant 289 : index
    %c0_7 = arith.constant 0 : index
    %17 = vector.load %arg2[%c289, %c0_7] : memref<1576x128xf32, #tpu.memory_space<vmem>>, vector<1x128xf32>
    %18 = vector.broadcast %16 : vector<4x1xf32> to vector<4x128xf32>
    %19 = vector.broadcast %17 : vector<1x128xf32> to vector<4x128xf32>
    %20 = arith.mulf %18, %19 : vector<4x128xf32>
    %21 = arith.addf %11, %20 : vector<4x128xf32>
    %c0_8 = arith.constant 0 : index
    %c512 = arith.constant 512 : index
    %22 = vector.load %arg0[%c0_8, %c512] : memref<4x768xf32, #tpu.memory_space<vmem>>, vector<4x256xf32>
    %cst_9 = arith.constant dense<0.000000e+00> : vector<4xf32>
    %23 = vector.multi_reduction <add>, %22, %cst_9 [1] : vector<4x256xf32> to vector<4xf32>
    %24 = vector.shape_cast %23 : vector<4xf32> to vector<4x1xf32>
    %cst_10 = arith.constant 2.560000e+02 : f32
    %25 = vector.broadcast %cst_10 : f32 to vector<4x1xf32>
    %26 = arith.divf %24, %25 : vector<4x1xf32>
    %c290 = arith.constant 290 : index
    %c0_11 = arith.constant 0 : index
    %27 = vector.load %arg2[%c290, %c0_11] : memref<1576x128xf32, #tpu.memory_space<vmem>>, vector<1x128xf32>
    %28 = vector.broadcast %26 : vector<4x1xf32> to vector<4x128xf32>
    %29 = vector.broadcast %27 : vector<1x128xf32> to vector<4x128xf32>
    %30 = arith.mulf %28, %29 : vector<4x128xf32>
    %31 = arith.addf %21, %30 : vector<4x128xf32>
    %c0_12 = arith.constant 0 : index
    %c0_13 = arith.constant 0 : index
    %c0_14 = arith.constant 0 : index
    %32 = vector.load %arg1[%c0_12, %c0_13, %c0_14] : memref<4x8x128xf32, #tpu.memory_space<vmem>>, vector<4x8x128xf32>
    %33 = vector.shape_cast %32 : vector<4x8x128xf32> to vector<32x128xf32>
    %c0_15 = arith.constant 0 : index
    %c0_16 = arith.constant 0 : index
    %34 = vector.load %arg2[%c0_15, %c0_16] : memref<1576x128xf32, #tpu.memory_space<vmem>>, vector<128x128xf32>
    %cst_17 = arith.constant dense<0.000000e+00> : vector<32x128xf32>
    %35 = tpu.matmul %33, %34, %cst_17 {dimension_numbers = #tpu.dot_dimension_numbers<[1], [0], [0], [1], [0, 0, 1, 1], [], []>} : vector<32x128xf32>, vector<128x128xf32>, vector<32x128xf32> -> vector<32x128xf32>
    %c0_18 = arith.constant 0 : index
    %c0_19 = arith.constant 0 : index
    %36 = vector.load %arg3[%c0_18, %c0_19] : memref<24x128xf32, #tpu.memory_space<vmem>>, vector<1x128xf32>
    %37 = vector.broadcast %36 : vector<1x128xf32> to vector<32x128xf32>
    %38 = arith.addf %35, %37 : vector<32x128xf32>
    %c128 = arith.constant 128 : index
    %c0_20 = arith.constant 0 : index
    %39 = vector.load %arg2[%c128, %c0_20] : memref<1576x128xf32, #tpu.memory_space<vmem>>, vector<128x128xf32>
    %cst_21 = arith.constant dense<0.000000e+00> : vector<32x128xf32>
    %40 = tpu.matmul %33, %39, %cst_21 {dimension_numbers = #tpu.dot_dimension_numbers<[1], [0], [0], [1], [0, 0, 1, 1], [], []>} : vector<32x128xf32>, vector<128x128xf32>, vector<32x128xf32> -> vector<32x128xf32>
    %c1 = arith.constant 1 : index
    %c0_22 = arith.constant 0 : index
    %41 = vector.load %arg3[%c1, %c0_22] : memref<24x128xf32, #tpu.memory_space<vmem>>, vector<1x128xf32>
    %42 = vector.broadcast %41 : vector<1x128xf32> to vector<32x128xf32>
    %43 = arith.addf %40, %42 : vector<32x128xf32>
    %c256_23 = arith.constant 256 : index
    %c0_24 = arith.constant 0 : index
    %44 = vector.load %arg2[%c256_23, %c0_24] : memref<1576x128xf32, #tpu.memory_space<vmem>>, vector<32x128xf32>
    %cst_25 = arith.constant 0.000000e+00 : f32
    %45 = vector.broadcast %cst_25 : f32 to vector<8x16xf32>
    %cst_26 = arith.constant 0.000000e+00 : f32
    %46 = vector.broadcast %cst_26 : f32 to vector<8x16xf32>
    %47 = vector.extract_strided_slice %38 {offsets = [0, 0], sizes = [8, 128], strides = [1, 1]} : vector<32x128xf32> to vector<8x128xf32>
    %cst_27 = arith.constant 0.000000e+00 : f32
    %48 = vector.broadcast %cst_27 : f32 to vector<8x128xf32>
    %49 = arith.addf %48, %47 : vector<8x128xf32>
    %50 = vector.extract_strided_slice %43 {offsets = [24, 0], sizes = [8, 128], strides = [1, 1]} : vector<32x128xf32> to vector<8x128xf32>
    %51 = arith.addf %49, %50 : vector<8x128xf32>
    %52 = vector.extract_strided_slice %51 {offsets = [0, 0], sizes = [8, 96], strides = [1, 1]} : vector<8x128xf32> to vector<8x96xf32>
    %53 = arith.negf %52 : vector<8x96xf32>
    %54 = math.exp %53 : vector<8x96xf32>
    %cst_28 = arith.constant 1.000000e+00 : f32
    %55 = vector.broadcast %cst_28 : f32 to vector<8x96xf32>
    %56 = arith.addf %55, %54 : vector<8x96xf32>
    %57 = arith.divf %55, %56 : vector<8x96xf32>
    %58 = vector.extract_strided_slice %51 {offsets = [0, 96], sizes = [8, 32], strides = [1, 1]} : vector<8x128xf32> to vector<8x32xf32>
    %59 = math.tanh %58 : vector<8x32xf32>
    %60 = vector.extract_strided_slice %57 {offsets = [0, 16], sizes = [8, 16], strides = [1, 1]} : vector<8x96xf32> to vector<8x16xf32>
    %61 = arith.mulf %60, %45 : vector<8x16xf32>
    %62 = vector.extract_strided_slice %57 {offsets = [0, 0], sizes = [8, 16], strides = [1, 1]} : vector<8x96xf32> to vector<8x16xf32>
    %63 = vector.extract_strided_slice %59 {offsets = [0, 0], sizes = [8, 16], strides = [1, 1]} : vector<8x32xf32> to vector<8x16xf32>
    %64 = arith.mulf %62, %63 : vector<8x16xf32>
    %65 = arith.addf %61, %64 : vector<8x16xf32>
    %66 = vector.extract_strided_slice %57 {offsets = [0, 64], sizes = [8, 16], strides = [1, 1]} : vector<8x96xf32> to vector<8x16xf32>
    %67 = arith.mulf %66, %46 : vector<8x16xf32>
    %68 = vector.extract_strided_slice %57 {offsets = [0, 48], sizes = [8, 16], strides = [1, 1]} : vector<8x96xf32> to vector<8x16xf32>
    %69 = vector.extract_strided_slice %59 {offsets = [0, 16], sizes = [8, 16], strides = [1, 1]} : vector<8x32xf32> to vector<8x16xf32>
    %70 = arith.mulf %68, %69 : vector<8x16xf32>
    %71 = arith.addf %67, %70 : vector<8x16xf32>
    %72 = vector.extract_strided_slice %57 {offsets = [0, 32], sizes = [8, 16], strides = [1, 1]} : vector<8x96xf32> to vector<8x16xf32>
    %73 = math.tanh %65 : vector<8x16xf32>
    %74 = arith.mulf %72, %73 : vector<8x16xf32>
    %75 = vector.extract_strided_slice %57 {offsets = [0, 80], sizes = [8, 16], strides = [1, 1]} : vector<8x96xf32> to vector<8x16xf32>
    %76 = math.tanh %71 : vector<8x16xf32>
    %77 = arith.mulf %75, %76 : vector<8x16xf32>
    %c0_29 = arith.constant 0 : index
    %c0_30 = arith.constant 0 : index
    %c0_31 = arith.constant 0 : index
    %78 = vector.load %arg5[%c0_29, %c0_30, %c0_31] : memref<4x8x32xf32, #tpu.memory_space<vmem>>, vector<1x8x16xf32>
    %79 = vector.shape_cast %78 : vector<1x8x16xf32> to vector<8x16xf32>
    %80 = vector.shape_cast %74 : vector<8x16xf32> to vector<1x8x16xf32>
    tpu.vector_store %arg5[%c0_29, %c0_30, %c0_31], %80 {strides = array<i32>} : memref<4x8x32xf32, #tpu.memory_space<vmem>>, vector<1x8x16xf32>,
    %c3 = arith.constant 3 : index
    %c0_32 = arith.constant 0 : index
    %c16 = arith.constant 16 : index
    %81 = vector.load %arg5[%c3, %c0_32, %c16] : memref<4x8x32xf32, #tpu.memory_space<vmem>>, vector<1x8x16xf32>
    %82 = vector.shape_cast %81 : vector<1x8x16xf32> to vector<8x16xf32>
    %83 = vector.shape_cast %77 : vector<8x16xf32> to vector<1x8x16xf32>
    tpu.vector_store %arg5[%c3, %c0_32, %c16], %83 {strides = array<i32>} : memref<4x8x32xf32, #tpu.memory_space<vmem>>, vector<1x8x16xf32>,
    %84 = tpu.concatenate %74, %77 in 1 : vector<8x16xf32>, vector<8x16xf32> -> vector<8x32xf32>
    %cst_33 = arith.constant dense<0.000000e+00> : vector<8x128xf32>
    %85 = tpu.matmul %84, %44, %cst_33 {dimension_numbers = #tpu.dot_dimension_numbers<[1], [0], [0], [1], [0, 0, 1, 1], [], []>} : vector<8x32xf32>, vector<32x128xf32>, vector<8x128xf32> -> vector<8x128xf32>
    %86 = vector.extract_strided_slice %38 {offsets = [8, 0], sizes = [8, 128], strides = [1, 1]} : vector<32x128xf32> to vector<8x128xf32>
    %87 = arith.addf %85, %86 : vector<8x128xf32>
    %88 = vector.extract_strided_slice %43 {offsets = [16, 0], sizes = [8, 128], strides = [1, 1]} : vector<32x128xf32> to vector<8x128xf32>
    %89 = arith.addf %87, %88 : vector<8x128xf32>
    %90 = vector.extract_strided_slice %89 {offsets = [0, 0], sizes = [8, 96], strides = [1, 1]} : vector<8x128xf32> to vector<8x96xf32>
    %91 = arith.negf %90 : vector<8x96xf32>
    %92 = math.exp %91 : vector<8x96xf32>
    %cst_34 = arith.constant 1.000000e+00 : f32
    %93 = vector.broadcast %cst_34 : f32 to vector<8x96xf32>
    %94 = arith.addf %93, %92 : vector<8x96xf32>
    %95 = arith.divf %93, %94 : vector<8x96xf32>
    %96 = vector.extract_strided_slice %89 {offsets = [0, 96], sizes = [8, 32], strides = [1, 1]} : vector<8x128xf32> to vector<8x32xf32>
    %97 = math.tanh %96 : vector<8x32xf32>
    %98 = vector.extract_strided_slice %95 {offsets = [0, 16], sizes = [8, 16], strides = [1, 1]} : vector<8x96xf32> to vector<8x16xf32>
    %99 = arith.mulf %98, %65 : vector<8x16xf32>
    %100 = vector.extract_strided_slice %95 {offsets = [0, 0], sizes = [8, 16], strides = [1, 1]} : vector<8x96xf32> to vector<8x16xf32>
    %101 = vector.extract_strided_slice %97 {offsets = [0, 0], sizes = [8, 16], strides = [1, 1]} : vector<8x32xf32> to vector<8x16xf32>
    %102 = arith.mulf %100, %101 : vector<8x16xf32>
    %103 = arith.addf %99, %102 : vector<8x16xf32>
    %104 = vector.extract_strided_slice %95 {offsets = [0, 64], sizes = [8, 16], strides = [1, 1]} : vector<8x96xf32> to vector<8x16xf32>
    %105 = arith.mulf %104, %71 : vector<8x16xf32>
    %106 = vector.extract_strided_slice %95 {offsets = [0, 48], sizes = [8, 16], strides = [1, 1]} : vector<8x96xf32> to vector<8x16xf32>
    %107 = vector.extract_strided_slice %97 {offsets = [0, 16], sizes = [8, 16], strides = [1, 1]} : vector<8x32xf32> to vector<8x16xf32>
    %108 = arith.mulf %106, %107 : vector<8x16xf32>
    %109 = arith.addf %105, %108 : vector<8x16xf32>
    %110 = vector.extract_strided_slice %95 {offsets = [0, 32], sizes = [8, 16], strides = [1, 1]} : vector<8x96xf32> to vector<8x16xf32>
    %111 = math.tanh %103 : vector<8x16xf32>
    %112 = arith.mulf %110, %111 : vector<8x16xf32>
    %113 = vector.extract_strided_slice %95 {offsets = [0, 80], sizes = [8, 16], strides = [1, 1]} : vector<8x96xf32> to vector<8x16xf32>
    %114 = math.tanh %109 : vector<8x16xf32>
    %115 = arith.mulf %113, %114 : vector<8x16xf32>
    %c1_35 = arith.constant 1 : index
    %c0_36 = arith.constant 0 : index
    %c0_37 = arith.constant 0 : index
    %116 = vector.load %arg5[%c1_35, %c0_36, %c0_37] : memref<4x8x32xf32, #tpu.memory_space<vmem>>, vector<1x8x16xf32>
    %117 = vector.shape_cast %116 : vector<1x8x16xf32> to vector<8x16xf32>
    %118 = vector.shape_cast %112 : vector<8x16xf32> to vector<1x8x16xf32>
    tpu.vector_store %arg5[%c1_35, %c0_36, %c0_37], %118 {strides = array<i32>} : memref<4x8x32xf32, #tpu.memory_space<vmem>>, vector<1x8x16xf32>,
    %c2_38 = arith.constant 2 : index
    %c0_39 = arith.constant 0 : index
    %c16_40 = arith.constant 16 : index
    %119 = vector.load %arg5[%c2_38, %c0_39, %c16_40] : memref<4x8x32xf32, #tpu.memory_space<vmem>>, vector<1x8x16xf32>
    %120 = vector.shape_cast %119 : vector<1x8x16xf32> to vector<8x16xf32>
    %121 = vector.shape_cast %115 : vector<8x16xf32> to vector<1x8x16xf32>
    tpu.vector_store %arg5[%c2_38, %c0_39, %c16_40], %121 {strides = array<i32>} : memref<4x8x32xf32, #tpu.memory_space<vmem>>, vector<1x8x16xf32>,
    %122 = tpu.concatenate %112, %115 in 1 : vector<8x16xf32>, vector<8x16xf32> -> vector<8x32xf32>
    %cst_41 = arith.constant dense<0.000000e+00> : vector<8x128xf32>
    %123 = tpu.matmul %122, %44, %cst_41 {dimension_numbers = #tpu.dot_dimension_numbers<[1], [0], [0], [1], [0, 0, 1, 1], [], []>} : vector<8x32xf32>, vector<32x128xf32>, vector<8x128xf32> -> vector<8x128xf32>
    %124 = vector.extract_strided_slice %38 {offsets = [16, 0], sizes = [8, 128], strides = [1, 1]} : vector<32x128xf32> to vector<8x128xf32>
    %125 = arith.addf %123, %124 : vector<8x128xf32>
    %126 = vector.extract_strided_slice %43 {offsets = [8, 0], sizes = [8, 128], strides = [1, 1]} : vector<32x128xf32> to vector<8x128xf32>
    %127 = arith.addf %125, %126 : vector<8x128xf32>
    %128 = vector.extract_strided_slice %127 {offsets = [0, 0], sizes = [8, 96], strides = [1, 1]} : vector<8x128xf32> to vector<8x96xf32>
    %129 = arith.negf %128 : vector<8x96xf32>
    %130 = math.exp %129 : vector<8x96xf32>
    %cst_42 = arith.constant 1.000000e+00 : f32
    %131 = vector.broadcast %cst_42 : f32 to vector<8x96xf32>
    %132 = arith.addf %131, %130 : vector<8x96xf32>
    %133 = arith.divf %131, %132 : vector<8x96xf32>
    %134 = vector.extract_strided_slice %127 {offsets = [0, 96], sizes = [8, 32], strides = [1, 1]} : vector<8x128xf32> to vector<8x32xf32>
    %135 = math.tanh %134 : vector<8x32xf32>
    %136 = vector.extract_strided_slice %133 {offsets = [0, 16], sizes = [8, 16], strides = [1, 1]} : vector<8x96xf32> to vector<8x16xf32>
    %137 = arith.mulf %136, %103 : vector<8x16xf32>
    %138 = vector.extract_strided_slice %133 {offsets = [0, 0], sizes = [8, 16], strides = [1, 1]} : vector<8x96xf32> to vector<8x16xf32>
    %139 = vector.extract_strided_slice %135 {offsets = [0, 0], sizes = [8, 16], strides = [1, 1]} : vector<8x32xf32> to vector<8x16xf32>
    %140 = arith.mulf %138, %139 : vector<8x16xf32>
    %141 = arith.addf %137, %140 : vector<8x16xf32>
    %142 = vector.extract_strided_slice %133 {offsets = [0, 64], sizes = [8, 16], strides = [1, 1]} : vector<8x96xf32> to vector<8x16xf32>
    %143 = arith.mulf %142, %109 : vector<8x16xf32>
    %144 = vector.extract_strided_slice %133 {offsets = [0, 48], sizes = [8, 16], strides = [1, 1]} : vector<8x96xf32> to vector<8x16xf32>
    %145 = vector.extract_strided_slice %135 {offsets = [0, 16], sizes = [8, 16], strides = [1, 1]} : vector<8x32xf32> to vector<8x16xf32>
    %146 = arith.mulf %144, %145 : vector<8x16xf32>
    %147 = arith.addf %143, %146 : vector<8x16xf32>
    %148 = vector.extract_strided_slice %133 {offsets = [0, 32], sizes = [8, 16], strides = [1, 1]} : vector<8x96xf32> to vector<8x16xf32>
    %149 = math.tanh %141 : vector<8x16xf32>
    %150 = arith.mulf %148, %149 : vector<8x16xf32>
    %151 = vector.extract_strided_slice %133 {offsets = [0, 80], sizes = [8, 16], strides = [1, 1]} : vector<8x96xf32> to vector<8x16xf32>
    %152 = math.tanh %147 : vector<8x16xf32>
    %153 = arith.mulf %151, %152 : vector<8x16xf32>
    %c2_43 = arith.constant 2 : index
    %c0_44 = arith.constant 0 : index
    %c0_45 = arith.constant 0 : index
    %154 = vector.load %arg5[%c2_43, %c0_44, %c0_45] : memref<4x8x32xf32, #tpu.memory_space<vmem>>, vector<1x8x16xf32>
    %155 = vector.shape_cast %154 : vector<1x8x16xf32> to vector<8x16xf32>
    %156 = vector.shape_cast %150 : vector<8x16xf32> to vector<1x8x16xf32>
    tpu.vector_store %arg5[%c2_43, %c0_44, %c0_45], %156 {strides = array<i32>} : memref<4x8x32xf32, #tpu.memory_space<vmem>>, vector<1x8x16xf32>,
    %c1_46 = arith.constant 1 : index
    %c0_47 = arith.constant 0 : index
    %c16_48 = arith.constant 16 : index
    %157 = vector.load %arg5[%c1_46, %c0_47, %c16_48] : memref<4x8x32xf32, #tpu.memory_space<vmem>>, vector<1x8x16xf32>
    %158 = vector.shape_cast %157 : vector<1x8x16xf32> to vector<8x16xf32>
    %159 = vector.shape_cast %153 : vector<8x16xf32> to vector<1x8x16xf32>
    tpu.vector_store %arg5[%c1_46, %c0_47, %c16_48], %159 {strides = array<i32>} : memref<4x8x32xf32, #tpu.memory_space<vmem>>, vector<1x8x16xf32>,
    %160 = tpu.concatenate %150, %153 in 1 : vector<8x16xf32>, vector<8x16xf32> -> vector<8x32xf32>
    %cst_49 = arith.constant dense<0.000000e+00> : vector<8x128xf32>
    %161 = tpu.matmul %160, %44, %cst_49 {dimension_numbers = #tpu.dot_dimension_numbers<[1], [0], [0], [1], [0, 0, 1, 1], [], []>} : vector<8x32xf32>, vector<32x128xf32>, vector<8x128xf32> -> vector<8x128xf32>
    %162 = vector.extract_strided_slice %38 {offsets = [24, 0], sizes = [8, 128], strides = [1, 1]} : vector<32x128xf32> to vector<8x128xf32>
    %163 = arith.addf %161, %162 : vector<8x128xf32>
    %164 = vector.extract_strided_slice %43 {offsets = [0, 0], sizes = [8, 128], strides = [1, 1]} : vector<32x128xf32> to vector<8x128xf32>
    %165 = arith.addf %163, %164 : vector<8x128xf32>
    %166 = vector.extract_strided_slice %165 {offsets = [0, 0], sizes = [8, 96], strides = [1, 1]} : vector<8x128xf32> to vector<8x96xf32>
    %167 = arith.negf %166 : vector<8x96xf32>
    %168 = math.exp %167 : vector<8x96xf32>
    %cst_50 = arith.constant 1.000000e+00 : f32
    %169 = vector.broadcast %cst_50 : f32 to vector<8x96xf32>
    %170 = arith.addf %169, %168 : vector<8x96xf32>
    %171 = arith.divf %169, %170 : vector<8x96xf32>
    %172 = vector.extract_strided_slice %165 {offsets = [0, 96], sizes = [8, 32], strides = [1, 1]} : vector<8x128xf32> to vector<8x32xf32>
    %173 = math.tanh %172 : vector<8x32xf32>
    %174 = vector.extract_strided_slice %171 {offsets = [0, 16], sizes = [8, 16], strides = [1, 1]} : vector<8x96xf32> to vector<8x16xf32>
    %175 = arith.mulf %174, %141 : vector<8x16xf32>
    %176 = vector.extract_strided_slice %171 {offsets = [0, 0], sizes = [8, 16], strides = [1, 1]} : vector<8x96xf32> to vector<8x16xf32>
    %177 = vector.extract_strided_slice %173 {offsets = [0, 0], sizes = [8, 16], strides = [1, 1]} : vector<8x32xf32> to vector<8x16xf32>
    %178 = arith.mulf %176, %177 : vector<8x16xf32>
    %179 = arith.addf %175, %178 : vector<8x16xf32>
    %180 = vector.extract_strided_slice %171 {offsets = [0, 64], sizes = [8, 16], strides = [1, 1]} : vector<8x96xf32> to vector<8x16xf32>
    %181 = arith.mulf %180, %147 : vector<8x16xf32>
    %182 = vector.extract_strided_slice %171 {offsets = [0, 48], sizes = [8, 16], strides = [1, 1]} : vector<8x96xf32> to vector<8x16xf32>
    %183 = vector.extract_strided_slice %173 {offsets = [0, 16], sizes = [8, 16], strides = [1, 1]} : vector<8x32xf32> to vector<8x16xf32>
    %184 = arith.mulf %182, %183 : vector<8x16xf32>
    %185 = arith.addf %181, %184 : vector<8x16xf32>
    %186 = vector.extract_strided_slice %171 {offsets = [0, 32], sizes = [8, 16], strides = [1, 1]} : vector<8x96xf32> to vector<8x16xf32>
    %187 = math.tanh %179 : vector<8x16xf32>
    %188 = arith.mulf %186, %187 : vector<8x16xf32>
    %189 = vector.extract_strided_slice %171 {offsets = [0, 80], sizes = [8, 16], strides = [1, 1]} : vector<8x96xf32> to vector<8x16xf32>
    %190 = math.tanh %185 : vector<8x16xf32>
    %191 = arith.mulf %189, %190 : vector<8x16xf32>
    %c3_51 = arith.constant 3 : index
    %c0_52 = arith.constant 0 : index
    %c0_53 = arith.constant 0 : index
    %192 = vector.load %arg5[%c3_51, %c0_52, %c0_53] : memref<4x8x32xf32, #tpu.memory_space<vmem>>, vector<1x8x16xf32>
    %193 = vector.shape_cast %192 : vector<1x8x16xf32> to vector<8x16xf32>
    %194 = vector.shape_cast %188 : vector<8x16xf32> to vector<1x8x16xf32>
    tpu.vector_store %arg5[%c3_51, %c0_52, %c0_53], %194 {strides = array<i32>} : memref<4x8x32xf32, #tpu.memory_space<vmem>>, vector<1x8x16xf32>,
    %c0_54 = arith.constant 0 : index
    %c0_55 = arith.constant 0 : index
    %c16_56 = arith.constant 16 : index
    %195 = vector.load %arg5[%c0_54, %c0_55, %c16_56] : memref<4x8x32xf32, #tpu.memory_space<vmem>>, vector<1x8x16xf32>
    %196 = vector.shape_cast %195 : vector<1x8x16xf32> to vector<8x16xf32>
    %197 = vector.shape_cast %191 : vector<8x16xf32> to vector<1x8x16xf32>
    tpu.vector_store %arg5[%c0_54, %c0_55, %c16_56], %197 {strides = array<i32>} : memref<4x8x32xf32, #tpu.memory_space<vmem>>, vector<1x8x16xf32>,
    %c0_57 = arith.constant 0 : index
    %c0_58 = arith.constant 0 : index
    %c0_59 = arith.constant 0 : index
    %198 = vector.load %arg5[%c0_57, %c0_58, %c0_59] : memref<4x8x32xf32, #tpu.memory_space<vmem>>, vector<4x8x32xf32>
    %c3_60 = arith.constant 3 : index
    %c0_61 = arith.constant 0 : index
    %199 = vector.load %arg3[%c3_60, %c0_61] : memref<24x128xf32, #tpu.memory_space<vmem>>, vector<1x32xf32>
    %200 = vector.shape_cast %199 : vector<1x32xf32> to vector<1x1x32xf32>
    %201 = vector.broadcast %200 : vector<1x1x32xf32> to vector<4x8x32xf32>
    %202 = arith.mulf %198, %201 : vector<4x8x32xf32>
    %cst_62 = arith.constant dense<0.000000e+00> : vector<4x8xf32>
    %203 = vector.multi_reduction <add>, %202, %cst_62 [2] : vector<4x8x32xf32> to vector<4x8xf32>
    %204 = vector.shape_cast %203 : vector<4x8xf32> to vector<4x8x1xf32>
    %cst_63 = arith.constant dense<0xFF800000> : vector<4x1xf32>
    %205 = vector.multi_reduction <maximumf>, %204, %cst_63 [1] : vector<4x8x1xf32> to vector<4x1xf32>
    %206 = vector.shape_cast %205 : vector<4x1xf32> to vector<4x1x1xf32>
    %207 = vector.broadcast %206 : vector<4x1x1xf32> to vector<4x8x1xf32>
    %208 = arith.subf %204, %207 : vector<4x8x1xf32>
    %209 = math.exp %208 : vector<4x8x1xf32>
    %cst_64 = arith.constant dense<0.000000e+00> : vector<4x1xf32>
    %210 = vector.multi_reduction <add>, %209, %cst_64 [1] : vector<4x8x1xf32> to vector<4x1xf32>
    %211 = vector.shape_cast %210 : vector<4x1xf32> to vector<4x1x1xf32>
    %212 = tpu.reciprocal %211 {approx = true} : vector<4x1x1xf32> -> vector<4x1x1xf32>
    %213 = vector.broadcast %212 : vector<4x1x1xf32> to vector<4x8x1xf32>
    %214 = arith.mulf %209, %213 : vector<4x8x1xf32>
    %215 = vector.broadcast %214 : vector<4x8x1xf32> to vector<4x8x128xf32>
    %216 = arith.mulf %32, %215 : vector<4x8x128xf32>
    %cst_65 = arith.constant dense<0.000000e+00> : vector<4x128xf32>
    %217 = vector.multi_reduction <add>, %216, %cst_65 [1] : vector<4x8x128xf32> to vector<4x128xf32>
    %218 = tpu.concatenate %217, %31 in 0 : vector<4x128xf32>, vector<4x128xf32> -> vector<8x128xf32>
    %c296 = arith.constant 296 : index
    %c0_66 = arith.constant 0 : index
    %219 = vector.load %arg2[%c296, %c0_66] : memref<1576x128xf32, #tpu.memory_space<vmem>>, vector<128x128xf32>
    %cst_67 = arith.constant dense<0.000000e+00> : vector<8x128xf32>
    %220 = tpu.matmul %218, %219, %cst_67 {dimension_numbers = #tpu.dot_dimension_numbers<[1], [0], [0], [1], [0, 0, 1, 1], [], []>} : vector<8x128xf32>, vector<128x128xf32>, vector<8x128xf32> -> vector<8x128xf32>
    %c4 = arith.constant 4 : index
    %c0_68 = arith.constant 0 : index
    %221 = vector.load %arg3[%c4, %c0_68] : memref<24x128xf32, #tpu.memory_space<vmem>>, vector<1x128xf32>
    %222 = vector.broadcast %221 : vector<1x128xf32> to vector<8x128xf32>
    %223 = arith.addf %220, %222 : vector<8x128xf32>
    %224 = vector.extract_strided_slice %223 {offsets = [0, 0], sizes = [4, 128], strides = [1, 1]} : vector<8x128xf32> to vector<4x128xf32>
    %225 = vector.extract_strided_slice %223 {offsets = [4, 0], sizes = [4, 128], strides = [1, 1]} : vector<8x128xf32> to vector<4x128xf32>
    %c424 = arith.constant 424 : index
    %c0_69 = arith.constant 0 : index
    %226 = vector.load %arg2[%c424, %c0_69] : memref<1576x128xf32, #tpu.memory_space<vmem>>, vector<128x128xf32>
    %cst_70 = arith.constant dense<0.000000e+00> : vector<8x128xf32>
    %227 = tpu.matmul %223, %226, %cst_70 {dimension_numbers = #tpu.dot_dimension_numbers<[1], [0], [0], [1], [0, 0, 1, 1], [], []>} : vector<8x128xf32>, vector<128x128xf32>, vector<8x128xf32> -> vector<8x128xf32>
    %c5 = arith.constant 5 : index
    %c0_71 = arith.constant 0 : index
    %228 = vector.load %arg3[%c5, %c0_71] : memref<24x128xf32, #tpu.memory_space<vmem>>, vector<1x128xf32>
    %229 = vector.broadcast %228 : vector<1x128xf32> to vector<8x128xf32>
    %230 = arith.addf %227, %229 : vector<8x128xf32>
    %231 = vector.extract_strided_slice %230 {offsets = [0, 0], sizes = [4, 128], strides = [1, 1]} : vector<8x128xf32> to vector<4x128xf32>
    %232 = vector.extract_strided_slice %230 {offsets = [4, 0], sizes = [4, 128], strides = [1, 1]} : vector<8x128xf32> to vector<4x128xf32>
    %233 = arith.addf %231, %224 : vector<4x128xf32>
    %c7 = arith.constant 7 : index
    %c0_72 = arith.constant 0 : index
    %234 = vector.load %arg3[%c7, %c0_72] : memref<24x128xf32, #tpu.memory_space<vmem>>, vector<1x128xf32>
    %c8 = arith.constant 8 : index
    %c0_73 = arith.constant 0 : index
    %235 = vector.load %arg3[%c8, %c0_73] : memref<24x128xf32, #tpu.memory_space<vmem>>, vector<1x128xf32>
    %cst_74 = arith.constant dense<0.000000e+00> : vector<4xf32>
    %236 = vector.multi_reduction <add>, %233, %cst_74 [1] : vector<4x128xf32> to vector<4xf32>
    %237 = vector.shape_cast %236 : vector<4xf32> to vector<4x1xf32>
    %cst_75 = arith.constant 3.125000e-02 : f32
    %238 = vector.broadcast %cst_75 : f32 to vector<4x1xf32>
    %239 = arith.mulf %237, %238 : vector<4x1xf32>
    %240 = arith.mulf %233, %233 : vector<4x128xf32>
    %cst_76 = arith.constant dense<0.000000e+00> : vector<4xf32>
    %241 = vector.multi_reduction <add>, %240, %cst_76 [1] : vector<4x128xf32> to vector<4xf32>
    %242 = vector.shape_cast %241 : vector<4xf32> to vector<4x1xf32>
    %cst_77 = arith.constant 3.125000e-02 : f32
    %243 = vector.broadcast %cst_77 : f32 to vector<4x1xf32>
    %244 = arith.mulf %242, %243 : vector<4x1xf32>
    %245 = arith.mulf %239, %239 : vector<4x1xf32>
    %246 = arith.subf %244, %245 : vector<4x1xf32>
    %247 = vector.broadcast %239 : vector<4x1xf32> to vector<4x128xf32>
    %248 = arith.subf %233, %247 : vector<4x128xf32>
    %cst_78 = arith.constant 9.99999974E-6 : f32
    %249 = vector.broadcast %cst_78 : f32 to vector<4x1xf32>
    %250 = arith.addf %246, %249 : vector<4x1xf32>
    %251 = math.rsqrt %250 : vector<4x1xf32>
    %252 = vector.broadcast %251 : vector<4x1xf32> to vector<4x128xf32>
    %253 = arith.mulf %248, %252 : vector<4x128xf32>
    %254 = vector.broadcast %234 : vector<1x128xf32> to vector<4x128xf32>
    %255 = arith.mulf %253, %254 : vector<4x128xf32>
    %256 = vector.broadcast %235 : vector<1x128xf32> to vector<4x128xf32>
    %257 = arith.addf %255, %256 : vector<4x128xf32>
    %c680 = arith.constant 680 : index
    %c0_79 = arith.constant 0 : index
    %258 = vector.load %arg2[%c680, %c0_79] : memref<1576x128xf32, #tpu.memory_space<vmem>>, vector<128x128xf32>
    %cst_80 = arith.constant dense<0.000000e+00> : vector<4x128xf32>
    %259 = tpu.matmul %257, %258, %cst_80 {dimension_numbers = #tpu.dot_dimension_numbers<[1], [0], [0], [1], [0, 0, 1, 1], [], []>} : vector<4x128xf32>, vector<128x128xf32>, vector<4x128xf32> -> vector<4x128xf32>
    %c11 = arith.constant 11 : index
    %c0_81 = arith.constant 0 : index
    %260 = vector.load %arg3[%c11, %c0_81] : memref<24x128xf32, #tpu.memory_space<vmem>>, vector<1x128xf32>
    %261 = vector.broadcast %260 : vector<1x128xf32> to vector<4x128xf32>
    %262 = arith.addf %259, %261 : vector<4x128xf32>
    %cst_82 = arith.constant 0.000000e+00 : f32
    %263 = vector.broadcast %cst_82 : f32 to vector<4x128xf32>
    %264 = arith.maximumf %262, %263 : vector<4x128xf32>
    %c808 = arith.constant 808 : index
    %c0_83 = arith.constant 0 : index
    %265 = vector.load %arg2[%c808, %c0_83] : memref<1576x128xf32, #tpu.memory_space<vmem>>, vector<128x128xf32>
    %cst_84 = arith.constant dense<0.000000e+00> : vector<4x128xf32>
    %266 = tpu.matmul %264, %265, %cst_84 {dimension_numbers = #tpu.dot_dimension_numbers<[1], [0], [0], [1], [0, 0, 1, 1], [], []>} : vector<4x128xf32>, vector<128x128xf32>, vector<4x128xf32> -> vector<4x128xf32>
    %c12 = arith.constant 12 : index
    %c0_85 = arith.constant 0 : index
    %267 = vector.load %arg3[%c12, %c0_85] : memref<24x128xf32, #tpu.memory_space<vmem>>, vector<1x128xf32>
    %268 = vector.broadcast %267 : vector<1x128xf32> to vector<4x128xf32>
    %269 = arith.addf %266, %268 : vector<4x128xf32>
    %270 = arith.addf %269, %257 : vector<4x128xf32>
    %c9 = arith.constant 9 : index
    %c0_86 = arith.constant 0 : index
    %271 = vector.load %arg3[%c9, %c0_86] : memref<24x128xf32, #tpu.memory_space<vmem>>, vector<1x128xf32>
    %c10 = arith.constant 10 : index
    %c0_87 = arith.constant 0 : index
    %272 = vector.load %arg3[%c10, %c0_87] : memref<24x128xf32, #tpu.memory_space<vmem>>, vector<1x128xf32>
    %cst_88 = arith.constant dense<0.000000e+00> : vector<4xf32>
    %273 = vector.multi_reduction <add>, %270, %cst_88 [1] : vector<4x128xf32> to vector<4xf32>
    %274 = vector.shape_cast %273 : vector<4xf32> to vector<4x1xf32>
    %cst_89 = arith.constant 3.125000e-02 : f32
    %275 = vector.broadcast %cst_89 : f32 to vector<4x1xf32>
    %276 = arith.mulf %274, %275 : vector<4x1xf32>
    %277 = arith.mulf %270, %270 : vector<4x128xf32>
    %cst_90 = arith.constant dense<0.000000e+00> : vector<4xf32>
    %278 = vector.multi_reduction <add>, %277, %cst_90 [1] : vector<4x128xf32> to vector<4xf32>
    %279 = vector.shape_cast %278 : vector<4xf32> to vector<4x1xf32>
    %cst_91 = arith.constant 3.125000e-02 : f32
    %280 = vector.broadcast %cst_91 : f32 to vector<4x1xf32>
    %281 = arith.mulf %279, %280 : vector<4x1xf32>
    %282 = arith.mulf %276, %276 : vector<4x1xf32>
    %283 = arith.subf %281, %282 : vector<4x1xf32>
    %284 = vector.broadcast %276 : vector<4x1xf32> to vector<4x128xf32>
    %285 = arith.subf %270, %284 : vector<4x128xf32>
    %cst_92 = arith.constant 9.99999974E-6 : f32
    %286 = vector.broadcast %cst_92 : f32 to vector<4x1xf32>
    %287 = arith.addf %283, %286 : vector<4x1xf32>
    %288 = math.rsqrt %287 : vector<4x1xf32>
    %289 = vector.broadcast %288 : vector<4x1xf32> to vector<4x128xf32>
    %290 = arith.mulf %285, %289 : vector<4x128xf32>
    %291 = vector.broadcast %271 : vector<1x128xf32> to vector<4x128xf32>
    %292 = arith.mulf %290, %291 : vector<4x128xf32>
    %293 = vector.broadcast %272 : vector<1x128xf32> to vector<4x128xf32>
    %294 = arith.addf %292, %293 : vector<4x128xf32>
    %c552 = arith.constant 552 : index
    %c0_93 = arith.constant 0 : index
    %295 = vector.load %arg2[%c552, %c0_93] : memref<1576x128xf32, #tpu.memory_space<vmem>>, vector<128x128xf32>
    %cst_94 = arith.constant dense<0.000000e+00> : vector<4x128xf32>
    %296 = tpu.matmul %294, %295, %cst_94 {dimension_numbers = #tpu.dot_dimension_numbers<[1], [0], [0], [1], [0, 0, 1, 1], [], []>} : vector<4x128xf32>, vector<128x128xf32>, vector<4x128xf32> -> vector<4x128xf32>
    %c6 = arith.constant 6 : index
    %c0_95 = arith.constant 0 : index
    %297 = vector.load %arg3[%c6, %c0_95] : memref<24x128xf32, #tpu.memory_space<vmem>>, vector<1x128xf32>
    %298 = vector.broadcast %297 : vector<1x128xf32> to vector<4x128xf32>
    %299 = arith.addf %296, %298 : vector<4x128xf32>
    %300 = arith.addf %299, %225 : vector<4x128xf32>
    %301 = arith.addf %232, %300 : vector<4x128xf32>
    %c7_96 = arith.constant 7 : index
    %c0_97 = arith.constant 0 : index
    %302 = vector.load %arg3[%c7_96, %c0_97] : memref<24x128xf32, #tpu.memory_space<vmem>>, vector<1x128xf32>
    %c8_98 = arith.constant 8 : index
    %c0_99 = arith.constant 0 : index
    %303 = vector.load %arg3[%c8_98, %c0_99] : memref<24x128xf32, #tpu.memory_space<vmem>>, vector<1x128xf32>
    %cst_100 = arith.constant dense<0.000000e+00> : vector<4xf32>
    %304 = vector.multi_reduction <add>, %301, %cst_100 [1] : vector<4x128xf32> to vector<4xf32>
    %305 = vector.shape_cast %304 : vector<4xf32> to vector<4x1xf32>
    %cst_101 = arith.constant 3.125000e-02 : f32
    %306 = vector.broadcast %cst_101 : f32 to vector<4x1xf32>
    %307 = arith.mulf %305, %306 : vector<4x1xf32>
    %308 = arith.mulf %301, %301 : vector<4x128xf32>
    %cst_102 = arith.constant dense<0.000000e+00> : vector<4xf32>
    %309 = vector.multi_reduction <add>, %308, %cst_102 [1] : vector<4x128xf32> to vector<4xf32>
    %310 = vector.shape_cast %309 : vector<4xf32> to vector<4x1xf32>
    %cst_103 = arith.constant 3.125000e-02 : f32
    %311 = vector.broadcast %cst_103 : f32 to vector<4x1xf32>
    %312 = arith.mulf %310, %311 : vector<4x1xf32>
    %313 = arith.mulf %307, %307 : vector<4x1xf32>
    %314 = arith.subf %312, %313 : vector<4x1xf32>
    %315 = vector.broadcast %307 : vector<4x1xf32> to vector<4x128xf32>
    %316 = arith.subf %301, %315 : vector<4x128xf32>
    %cst_104 = arith.constant 9.99999974E-6 : f32
    %317 = vector.broadcast %cst_104 : f32 to vector<4x1xf32>
    %318 = arith.addf %314, %317 : vector<4x1xf32>
    %319 = math.rsqrt %318 : vector<4x1xf32>
    %320 = vector.broadcast %319 : vector<4x1xf32> to vector<4x128xf32>
    %321 = arith.mulf %316, %320 : vector<4x128xf32>
    %322 = vector.broadcast %302 : vector<1x128xf32> to vector<4x128xf32>
    %323 = arith.mulf %321, %322 : vector<4x128xf32>
    %324 = vector.broadcast %303 : vector<1x128xf32> to vector<4x128xf32>
    %325 = arith.addf %323, %324 : vector<4x128xf32>
    %c680_105 = arith.constant 680 : index
    %c0_106 = arith.constant 0 : index
    %326 = vector.load %arg2[%c680_105, %c0_106] : memref<1576x128xf32, #tpu.memory_space<vmem>>, vector<128x128xf32>
    %cst_107 = arith.constant dense<0.000000e+00> : vector<4x128xf32>
    %327 = tpu.matmul %325, %326, %cst_107 {dimension_numbers = #tpu.dot_dimension_numbers<[1], [0], [0], [1], [0, 0, 1, 1], [], []>} : vector<4x128xf32>, vector<128x128xf32>, vector<4x128xf32> -> vector<4x128xf32>
    %c11_108 = arith.constant 11 : index
    %c0_109 = arith.constant 0 : index
    %328 = vector.load %arg3[%c11_108, %c0_109] : memref<24x128xf32, #tpu.memory_space<vmem>>, vector<1x128xf32>
    %329 = vector.broadcast %328 : vector<1x128xf32> to vector<4x128xf32>
    %330 = arith.addf %327, %329 : vector<4x128xf32>
    %cst_110 = arith.constant 0.000000e+00 : f32
    %331 = vector.broadcast %cst_110 : f32 to vector<4x128xf32>
    %332 = arith.maximumf %330, %331 : vector<4x128xf32>
    %c808_111 = arith.constant 808 : index
    %c0_112 = arith.constant 0 : index
    %333 = vector.load %arg2[%c808_111, %c0_112] : memref<1576x128xf32, #tpu.memory_space<vmem>>, vector<128x128xf32>
    %cst_113 = arith.constant dense<0.000000e+00> : vector<4x128xf32>
    %334 = tpu.matmul %332, %333, %cst_113 {dimension_numbers = #tpu.dot_dimension_numbers<[1], [0], [0], [1], [0, 0, 1, 1], [], []>} : vector<4x128xf32>, vector<128x128xf32>, vector<4x128xf32> -> vector<4x128xf32>
    %c12_114 = arith.constant 12 : index
    %c0_115 = arith.constant 0 : index
    %335 = vector.load %arg3[%c12_114, %c0_115] : memref<24x128xf32, #tpu.memory_space<vmem>>, vector<1x128xf32>
    %336 = vector.broadcast %335 : vector<1x128xf32> to vector<4x128xf32>
    %337 = arith.addf %334, %336 : vector<4x128xf32>
    %338 = arith.addf %337, %325 : vector<4x128xf32>
    %c9_116 = arith.constant 9 : index
    %c0_117 = arith.constant 0 : index
    %339 = vector.load %arg3[%c9_116, %c0_117] : memref<24x128xf32, #tpu.memory_space<vmem>>, vector<1x128xf32>
    %c10_118 = arith.constant 10 : index
    %c0_119 = arith.constant 0 : index
    %340 = vector.load %arg3[%c10_118, %c0_119] : memref<24x128xf32, #tpu.memory_space<vmem>>, vector<1x128xf32>
    %cst_120 = arith.constant dense<0.000000e+00> : vector<4xf32>
    %341 = vector.multi_reduction <add>, %338, %cst_120 [1] : vector<4x128xf32> to vector<4xf32>
    %342 = vector.shape_cast %341 : vector<4xf32> to vector<4x1xf32>
    %cst_121 = arith.constant 3.125000e-02 : f32
    %343 = vector.broadcast %cst_121 : f32 to vector<4x1xf32>
    %344 = arith.mulf %342, %343 : vector<4x1xf32>
    %345 = arith.mulf %338, %338 : vector<4x128xf32>
    %cst_122 = arith.constant dense<0.000000e+00> : vector<4xf32>
    %346 = vector.multi_reduction <add>, %345, %cst_122 [1] : vector<4x128xf32> to vector<4xf32>
    %347 = vector.shape_cast %346 : vector<4xf32> to vector<4x1xf32>
    %cst_123 = arith.constant 3.125000e-02 : f32
    %348 = vector.broadcast %cst_123 : f32 to vector<4x1xf32>
    %349 = arith.mulf %347, %348 : vector<4x1xf32>
    %350 = arith.mulf %344, %344 : vector<4x1xf32>
    %351 = arith.subf %349, %350 : vector<4x1xf32>
    %352 = vector.broadcast %344 : vector<4x1xf32> to vector<4x128xf32>
    %353 = arith.subf %338, %352 : vector<4x128xf32>
    %cst_124 = arith.constant 9.99999974E-6 : f32
    %354 = vector.broadcast %cst_124 : f32 to vector<4x1xf32>
    %355 = arith.addf %351, %354 : vector<4x1xf32>
    %356 = math.rsqrt %355 : vector<4x1xf32>
    %357 = vector.broadcast %356 : vector<4x1xf32> to vector<4x128xf32>
    %358 = arith.mulf %353, %357 : vector<4x128xf32>
    %359 = vector.broadcast %339 : vector<1x128xf32> to vector<4x128xf32>
    %360 = arith.mulf %358, %359 : vector<4x128xf32>
    %361 = vector.broadcast %340 : vector<1x128xf32> to vector<4x128xf32>
    %362 = arith.addf %360, %361 : vector<4x128xf32>
    %363 = tpu.concatenate %294, %362 in 0 : vector<4x128xf32>, vector<4x128xf32> -> vector<8x128xf32>
    %c936 = arith.constant 936 : index
    %c0_125 = arith.constant 0 : index
    %364 = vector.load %arg2[%c936, %c0_125] : memref<1576x128xf32, #tpu.memory_space<vmem>>, vector<128x128xf32>
    %cst_126 = arith.constant dense<0.000000e+00> : vector<8x128xf32>
    %365 = tpu.matmul %363, %364, %cst_126 {dimension_numbers = #tpu.dot_dimension_numbers<[1], [0], [0], [1], [0, 0, 1, 1], [], []>} : vector<8x128xf32>, vector<128x128xf32>, vector<8x128xf32> -> vector<8x128xf32>
    %c13 = arith.constant 13 : index
    %c0_127 = arith.constant 0 : index
    %366 = vector.load %arg3[%c13, %c0_127] : memref<24x128xf32, #tpu.memory_space<vmem>>, vector<1x128xf32>
    %367 = vector.broadcast %366 : vector<1x128xf32> to vector<8x128xf32>
    %368 = arith.addf %365, %367 : vector<8x128xf32>
    %369 = vector.extract_strided_slice %368 {offsets = [0, 0], sizes = [4, 128], strides = [1, 1]} : vector<8x128xf32> to vector<4x128xf32>
    %c1064 = arith.constant 1064 : index
    %c0_128 = arith.constant 0 : index
    %370 = vector.load %arg2[%c1064, %c0_128] : memref<1576x128xf32, #tpu.memory_space<vmem>>, vector<128x128xf32>
    %cst_129 = arith.constant dense<0.000000e+00> : vector<8x128xf32>
    %371 = tpu.matmul %368, %370, %cst_129 {dimension_numbers = #tpu.dot_dimension_numbers<[1], [0], [0], [1], [0, 0, 1, 1], [], []>} : vector<8x128xf32>, vector<128x128xf32>, vector<8x128xf32> -> vector<8x128xf32>
    %c14 = arith.constant 14 : index
    %c0_130 = arith.constant 0 : index
    %372 = vector.load %arg3[%c14, %c0_130] : memref<24x128xf32, #tpu.memory_space<vmem>>, vector<1x128xf32>
    %373 = vector.broadcast %372 : vector<1x128xf32> to vector<8x128xf32>
    %374 = arith.addf %371, %373 : vector<8x128xf32>
    %375 = vector.extract_strided_slice %374 {offsets = [0, 0], sizes = [4, 128], strides = [1, 1]} : vector<8x128xf32> to vector<4x128xf32>
    %376 = vector.extract_strided_slice %374 {offsets = [4, 0], sizes = [4, 128], strides = [1, 1]} : vector<8x128xf32> to vector<4x128xf32>
    %377 = arith.addf %375, %369 : vector<4x128xf32>
    %c15 = arith.constant 15 : index
    %c0_131 = arith.constant 0 : index
    %378 = vector.load %arg3[%c15, %c0_131] : memref<24x128xf32, #tpu.memory_space<vmem>>, vector<1x128xf32>
    %c16_132 = arith.constant 16 : index
    %c0_133 = arith.constant 0 : index
    %379 = vector.load %arg3[%c16_132, %c0_133] : memref<24x128xf32, #tpu.memory_space<vmem>>, vector<1x128xf32>
    %cst_134 = arith.constant dense<0.000000e+00> : vector<4xf32>
    %380 = vector.multi_reduction <add>, %377, %cst_134 [1] : vector<4x128xf32> to vector<4xf32>
    %381 = vector.shape_cast %380 : vector<4xf32> to vector<4x1xf32>
    %cst_135 = arith.constant 3.125000e-02 : f32
    %382 = vector.broadcast %cst_135 : f32 to vector<4x1xf32>
    %383 = arith.mulf %381, %382 : vector<4x1xf32>
    %384 = arith.mulf %377, %377 : vector<4x128xf32>
    %cst_136 = arith.constant dense<0.000000e+00> : vector<4xf32>
    %385 = vector.multi_reduction <add>, %384, %cst_136 [1] : vector<4x128xf32> to vector<4xf32>
    %386 = vector.shape_cast %385 : vector<4xf32> to vector<4x1xf32>
    %cst_137 = arith.constant 3.125000e-02 : f32
    %387 = vector.broadcast %cst_137 : f32 to vector<4x1xf32>
    %388 = arith.mulf %386, %387 : vector<4x1xf32>
    %389 = arith.mulf %383, %383 : vector<4x1xf32>
    %390 = arith.subf %388, %389 : vector<4x1xf32>
    %391 = vector.broadcast %383 : vector<4x1xf32> to vector<4x128xf32>
    %392 = arith.subf %377, %391 : vector<4x128xf32>
    %cst_138 = arith.constant 9.99999974E-6 : f32
    %393 = vector.broadcast %cst_138 : f32 to vector<4x1xf32>
    %394 = arith.addf %390, %393 : vector<4x1xf32>
    %395 = math.rsqrt %394 : vector<4x1xf32>
    %396 = vector.broadcast %395 : vector<4x1xf32> to vector<4x128xf32>
    %397 = arith.mulf %392, %396 : vector<4x128xf32>
    %398 = vector.broadcast %378 : vector<1x128xf32> to vector<4x128xf32>
    %399 = arith.mulf %397, %398 : vector<4x128xf32>
    %400 = vector.broadcast %379 : vector<1x128xf32> to vector<4x128xf32>
    %401 = arith.addf %399, %400 : vector<4x128xf32>
    %402 = arith.addf %376, %401 : vector<4x128xf32>
    %c15_139 = arith.constant 15 : index
    %c0_140 = arith.constant 0 : index
    %403 = vector.load %arg3[%c15_139, %c0_140] : memref<24x128xf32, #tpu.memory_space<vmem>>, vector<1x128xf32>
    %c16_141 = arith.constant 16 : index
    %c0_142 = arith.constant 0 : index
    %404 = vector.load %arg3[%c16_141, %c0_142] : memref<24x128xf32, #tpu.memory_space<vmem>>, vector<1x128xf32>
    %cst_143 = arith.constant dense<0.000000e+00> : vector<4xf32>
    %405 = vector.multi_reduction <add>, %402, %cst_143 [1] : vector<4x128xf32> to vector<4xf32>
    %406 = vector.shape_cast %405 : vector<4xf32> to vector<4x1xf32>
    %cst_144 = arith.constant 3.125000e-02 : f32
    %407 = vector.broadcast %cst_144 : f32 to vector<4x1xf32>
    %408 = arith.mulf %406, %407 : vector<4x1xf32>
    %409 = arith.mulf %402, %402 : vector<4x128xf32>
    %cst_145 = arith.constant dense<0.000000e+00> : vector<4xf32>
    %410 = vector.multi_reduction <add>, %409, %cst_145 [1] : vector<4x128xf32> to vector<4xf32>
    %411 = vector.shape_cast %410 : vector<4xf32> to vector<4x1xf32>
    %cst_146 = arith.constant 3.125000e-02 : f32
    %412 = vector.broadcast %cst_146 : f32 to vector<4x1xf32>
    %413 = arith.mulf %411, %412 : vector<4x1xf32>
    %414 = arith.mulf %408, %408 : vector<4x1xf32>
    %415 = arith.subf %413, %414 : vector<4x1xf32>
    %416 = vector.broadcast %408 : vector<4x1xf32> to vector<4x128xf32>
    %417 = arith.subf %402, %416 : vector<4x128xf32>
    %cst_147 = arith.constant 9.99999974E-6 : f32
    %418 = vector.broadcast %cst_147 : f32 to vector<4x1xf32>
    %419 = arith.addf %415, %418 : vector<4x1xf32>
    %420 = math.rsqrt %419 : vector<4x1xf32>
    %421 = vector.broadcast %420 : vector<4x1xf32> to vector<4x128xf32>
    %422 = arith.mulf %417, %421 : vector<4x128xf32>
    %423 = vector.broadcast %403 : vector<1x128xf32> to vector<4x128xf32>
    %424 = arith.mulf %422, %423 : vector<4x128xf32>
    %425 = vector.broadcast %404 : vector<1x128xf32> to vector<4x128xf32>
    %426 = arith.addf %424, %425 : vector<4x128xf32>
    %c1192 = arith.constant 1192 : index
    %c0_148 = arith.constant 0 : index
    %427 = vector.load %arg2[%c1192, %c0_148] : memref<1576x128xf32, #tpu.memory_space<vmem>>, vector<128x128xf32>
    %cst_149 = arith.constant dense<0.000000e+00> : vector<4x128xf32>
    %428 = tpu.matmul %426, %427, %cst_149 {dimension_numbers = #tpu.dot_dimension_numbers<[1], [0], [0], [1], [0, 0, 1, 1], [], []>} : vector<4x128xf32>, vector<128x128xf32>, vector<4x128xf32> -> vector<4x128xf32>
    %c19 = arith.constant 19 : index
    %c0_150 = arith.constant 0 : index
    %429 = vector.load %arg3[%c19, %c0_150] : memref<24x128xf32, #tpu.memory_space<vmem>>, vector<1x128xf32>
    %430 = vector.broadcast %429 : vector<1x128xf32> to vector<4x128xf32>
    %431 = arith.addf %428, %430 : vector<4x128xf32>
    %cst_151 = arith.constant 0.000000e+00 : f32
    %432 = vector.broadcast %cst_151 : f32 to vector<4x128xf32>
    %433 = arith.maximumf %431, %432 : vector<4x128xf32>
    %c1320 = arith.constant 1320 : index
    %c0_152 = arith.constant 0 : index
    %434 = vector.load %arg2[%c1320, %c0_152] : memref<1576x128xf32, #tpu.memory_space<vmem>>, vector<128x128xf32>
    %cst_153 = arith.constant dense<0.000000e+00> : vector<4x128xf32>
    %435 = tpu.matmul %433, %434, %cst_153 {dimension_numbers = #tpu.dot_dimension_numbers<[1], [0], [0], [1], [0, 0, 1, 1], [], []>} : vector<4x128xf32>, vector<128x128xf32>, vector<4x128xf32> -> vector<4x128xf32>
    %c20 = arith.constant 20 : index
    %c0_154 = arith.constant 0 : index
    %436 = vector.load %arg3[%c20, %c0_154] : memref<24x128xf32, #tpu.memory_space<vmem>>, vector<1x128xf32>
    %437 = vector.broadcast %436 : vector<1x128xf32> to vector<4x128xf32>
    %438 = arith.addf %435, %437 : vector<4x128xf32>
    %439 = arith.addf %438, %426 : vector<4x128xf32>
    %c17 = arith.constant 17 : index
    %c0_155 = arith.constant 0 : index
    %440 = vector.load %arg3[%c17, %c0_155] : memref<24x128xf32, #tpu.memory_space<vmem>>, vector<1x128xf32>
    %c18 = arith.constant 18 : index
    %c0_156 = arith.constant 0 : index
    %441 = vector.load %arg3[%c18, %c0_156] : memref<24x128xf32, #tpu.memory_space<vmem>>, vector<1x128xf32>
    %cst_157 = arith.constant dense<0.000000e+00> : vector<4xf32>
    %442 = vector.multi_reduction <add>, %439, %cst_157 [1] : vector<4x128xf32> to vector<4xf32>
    %443 = vector.shape_cast %442 : vector<4xf32> to vector<4x1xf32>
    %cst_158 = arith.constant 3.125000e-02 : f32
    %444 = vector.broadcast %cst_158 : f32 to vector<4x1xf32>
    %445 = arith.mulf %443, %444 : vector<4x1xf32>
    %446 = arith.mulf %439, %439 : vector<4x128xf32>
    %cst_159 = arith.constant dense<0.000000e+00> : vector<4xf32>
    %447 = vector.multi_reduction <add>, %446, %cst_159 [1] : vector<4x128xf32> to vector<4xf32>
    %448 = vector.shape_cast %447 : vector<4xf32> to vector<4x1xf32>
    %cst_160 = arith.constant 3.125000e-02 : f32
    %449 = vector.broadcast %cst_160 : f32 to vector<4x1xf32>
    %450 = arith.mulf %448, %449 : vector<4x1xf32>
    %451 = arith.mulf %445, %445 : vector<4x1xf32>
    %452 = arith.subf %450, %451 : vector<4x1xf32>
    %453 = vector.broadcast %445 : vector<4x1xf32> to vector<4x128xf32>
    %454 = arith.subf %439, %453 : vector<4x128xf32>
    %cst_161 = arith.constant 9.99999974E-6 : f32
    %455 = vector.broadcast %cst_161 : f32 to vector<4x1xf32>
    %456 = arith.addf %452, %455 : vector<4x1xf32>
    %457 = math.rsqrt %456 : vector<4x1xf32>
    %458 = vector.broadcast %457 : vector<4x1xf32> to vector<4x128xf32>
    %459 = arith.mulf %454, %458 : vector<4x128xf32>
    %460 = vector.broadcast %440 : vector<1x128xf32> to vector<4x128xf32>
    %461 = arith.mulf %459, %460 : vector<4x128xf32>
    %462 = vector.broadcast %441 : vector<1x128xf32> to vector<4x128xf32>
    %463 = arith.addf %461, %462 : vector<4x128xf32>
    %c1448 = arith.constant 1448 : index
    %c0_162 = arith.constant 0 : index
    %464 = vector.load %arg2[%c1448, %c0_162] : memref<1576x128xf32, #tpu.memory_space<vmem>>, vector<128x128xf32>
    %cst_163 = arith.constant dense<0.000000e+00> : vector<4x128xf32>
    %465 = tpu.matmul %463, %464, %cst_163 {dimension_numbers = #tpu.dot_dimension_numbers<[1], [0], [0], [1], [0, 0, 1, 1], [], []>} : vector<4x128xf32>, vector<128x128xf32>, vector<4x128xf32> -> vector<4x128xf32>
    %cst_164 = arith.constant 0.000000e+00 : f32
    %466 = vector.broadcast %cst_164 : f32 to vector<4x128xf32>
    %467 = arith.maximumf %465, %466 : vector<4x128xf32>
    %c0_165 = arith.constant 0 : index
    %c0_166 = arith.constant 0 : index
    %468 = vector.load %arg4[%c0_165, %c0_166] : memref<4x128xf32, #tpu.memory_space<vmem>>, vector<4x128xf32>
    tpu.vector_store %arg4[%c0_165, %c0_166], %467 {strides = array<i32>} : memref<4x128xf32, #tpu.memory_space<vmem>>, vector<4x128xf32>,
    return
  }
}

</mosaic_0001>

<bundles_post_ra>
// kernel: forward.1
= control target key start
LH: loop header
LB: loop body
LE: loop exit
PB: predicated region body
PF: predicated region fallthrough
CT: control target
= control target key end

     0   :  { %9 = vsyncpa [#allocation4], 0  ;;  %s3978_s0 = inlined_call_operand.vmem [shape: f32[4,768], index: 0, kind: input, shape index: {}]   ;;  %s3979_s1 = inlined_call_operand.vmem [shape: f32[4,8,128], index: 1, kind: input, shape index: {}]   ;;  %s3980_s2 = inlined_call_operand.hbm [shape: f32[1576,128], index: 2, kind: input, shape index: {}]   ;;  %s3981_s3 = inlined_call_operand.vmem [shape: f32[24,128], index: 3, kind: input, shape index: {}]   ;;  %s3982_s4 = inlined_call_operand.hbm [shape: f32[4,128], index: 4, kind: output, shape index: {}]  }
   0x1   :  { %10 = vsyncpa [#allocation5], 0  ;;  %s3451_s15 = smov [#allocation3]   ;;  %s3403_s19 = scalar_lea.hbm %s3980_s2, 25216 }
   0x2   :  { %s20_s16 = sshll.u32 %s3451_s15, 4  ;;  %p3404_p0 = scmp.ne.s32.totalorder %s3980_s2, %s3403_s19  ;;  %s21_s16 = int_to_ptr.vmem [resolvable:$true] %s20_s16 }
   0x3   :  { %p3407_p1 = scmp.lt.u32.totalorder %s3403_s19, %s3980_s2 }
   0x5   :  { %p3409_p2 = pnand %p3407_p1, %p3404_p0 }
   0x7   :  { %3412 = shalt.err (!%p3409_p2)
}
   0x8   :  { %s3413_s24 = scalar_lea.vmem %s21_s16, 25216  ;;  %p3418_p4 = scmp.lt.s32.totalorder %s21_s16, %s21_s16 }
   0x9   :  { %p3414_p3 = scmp.ne.s32.totalorder %s21_s16, %s3413_s24  ;;  %p3419_p5 = scmp.lt.s32.totalorder %s3413_s24, %s3413_s24 }
   0xb   :  { %p3420_p6 = por %p3419_p5, %p3418_p4 }
   0xd   :  { %p3421_p7 = pnand %p3420_p6, %p3414_p3 }
   0xf   :  { %3424 = shalt.err (!%p3421_p7)
}
  0x10   :  { %s3452_s25 = smov 128   ;;  %s3453_s26 = smov 8  }
  0x11   :  { %26 = dma.hbm_to_vmem [thread:$0]  %s3980_s2, 25216, %s21_s16, [#allocation4], %s3452_s25, %s3452_s25, %s3453_s26  }
  0x12   :  { %3447 = dma.done.wait [#allocation4], 25216  }
  0x13   :  { %3448 = vsyncadd [#allocation4], 4294942080  ;;  %v200_v0 = vld [vmem:[#allocation3 + $0x80] sm:$0xff]  ;;  %v201_v1 = vld [vmem:[#allocation3 + $0x88] sm:$0xff]  ;;  %s3455_s14 = smov 64   ;;  %s3456_s15 = smov 16  }
  0x14   :  { %v94_v2 = vld [vmem:[#allocation3] sm:$0xff]  ;;  %v2981_v3 = vpack.c.bf16 %v201_v1, %v200_v0  ;;  %v95_v4 = vld [vmem:[#allocation3 + $0x8] sm:$0xff]  ;;  %v202_v5 = vld [vmem:[#allocation3 + $0x90] sm:$0xff]  ;;  %vm3458_vm0 = vmmov 0   ;;  %s3460_s16 = smov 96   ;;  %vm355_vm1 = vcmask 130048  }
  0x15   :  { %v203_v6 = vld [vmem:[#allocation3 + $0x98] sm:$0xff]  ;;  %v2949_v7 = vpack.c.bf16 %v95_v4, %v94_v2  ;;  %v96_v9 = vld [vmem:[#allocation3 + $0x10] sm:$0xff]  ;;  %v204_v11 = vld [vmem:[#allocation3 + $0xa0] sm:$0xff]  ;;  %vm362_vm2 = vcmask 261248   ;;  %vm365_vm3 = vcmask 261120   ;;  %vm37_vm4 = vcmask 1043456  }
  0x16   :  { %v2985_v8 = vpack.c.bf16 %v203_v6, %v202_v5  ;;  %v97_v10 = vld [vmem:[#allocation3 + $0x18] sm:$0xff]  ;;  %2982 = vmatprep.subr.bf16.mxu1 %v2981_v3  ;;  %v205_v13 = vld [vmem:[#allocation3 + $0xa8] sm:$0xff]  ;;  %v98_v14 = vld [vmem:[#allocation3 + $0x20] sm:$0xff]  ;;  %vm867_vm5 = vcmask 1041409   ;;  %vm869_vm6 = vcmask 1042434   ;;  %vm871_vm7 = vcmask 1043459  }
  0x17   :  { %v2953_v12 = vpack.c.bf16 %v97_v10, %v96_v9  ;;  %v99_v15 = vld [vmem:[#allocation3 + $0x28] sm:$0xff]  ;;  %2984 = vmatpush3.bf16.msra.mxu1 %v2981_v3  ;;  %2950 = vmatprep.subr.bf16.mxu0 %v2949_v7  ;;  %v2989_v16 = vpack.c.bf16 %v205_v13, %v204_v11  ;;  %v206_v18 = vld [vmem:[#allocation3 + $0xb0] sm:$0xff]  ;;  %v207_v19 = vld [vmem:[#allocation3 + $0xb8] sm:$0xff]  ;;  %vm1398_vm8 = vcmask 1047556   ;;  %s3461_s30 = smov [#allocation6]  }
  0x18   :  { %2952 = vmatpush3.bf16.msra.mxu0 %v2949_v7  ;;  %2986 = vmatprep.subr.bf16.mxu1 %v2985_v8  ;;  %v2957_v17 = vpack.c.bf16 %v99_v15, %v98_v14  ;;  %v100_v20 = vld [vmem:[#allocation3 + $0x30] sm:$0xff]  ;;  %v101_v21 = vld [vmem:[#allocation3 + $0x38] sm:$0xff]  ;;  %v2993_v22 = vpack.c.bf16 %v207_v19, %v206_v18  ;;  %v208_v24 = vld [vmem:[#allocation3 + $0xc0] sm:$0xff]  ;;  %v3457_v18 = vmov 0.0|0.0   ;;  %s2121_s5 = sshll.u32 %s3461_s30, 4  ;;  %s2122_s5 = int_to_ptr.vmem [resolvable:$true] %s2121_s5 }
  0x19   :  { %2954 = vmatprep.subr.bf16.mxu0 %v2953_v12  ;;  %v2961_v23 = vpack.c.bf16 %v101_v21, %v100_v20  ;;  %v209_v25 = vld [vmem:[#allocation3 + $0xc8] sm:$0xff]  ;;  %v3502_v26 = vld [vmem:[%s3979_s1] sm:$0xff]  ;;  %v210_v31 = vld [vmem:[#allocation3 + $0xd0] sm:$0xff]  ;;  %s3425_s6 = scalar_lea.vmem %s2122_s5, 64  ;;  %p3430_p9 = scmp.lt.s32.totalorder %s2122_s5, %s2122_s5 }
  0x1a   :  { %v102_v27 = vld [vmem:[#allocation3 + $0x40] sm:$0xff]  ;;  %v103_v28 = vld [vmem:[#allocation3 + $0x48] sm:$0xff]  ;;  %2490 = vmatprep.mubr.f32.mxu1 %v3502_v26  ;;  %2452 = vmatprep.mubr.f32.mxu0 %v3502_v26  ;;  %v2997_v29 = vpack.c.bf16 %v209_v25, %v208_v24  ;;  %v211_v32 = vld [vmem:[#allocation3 + $0xd8] sm:$0xff]  ;;  %v3459_v25 = vmov 0.0   ;;  %p3426_p8 = scmp.ne.s32.totalorder %s2122_s5, %s3425_s6  ;;  %p3431_p10 = scmp.lt.s32.totalorder %s3425_s6, %s3425_s6 }
  0x1b   :  { %2988 = vmatpush3.bf16.msra.mxu1 %v2985_v8  ;;  %v2965_v30 = vpack.c.bf16 %v103_v28, %v102_v27  ;;  %v104_v33 = vld [vmem:[#allocation3 + $0x50] sm:$0xff]  ;;  %v105_v34 = vld [vmem:[#allocation3 + $0x58] sm:$0xff]  ;;  %v3001_v35 = vpack.c.bf16 %v211_v32, %v210_v31  ;;  %v212_v37 = vld [vmem:[#allocation3 + $0xe0] sm:$0xff] }
  0x1c   :  { %2956 = vmatpush3.bf16.msra.mxu0 %v2953_v12  ;;  %2990 = vmatprep.subr.bf16.mxu1 %v2989_v16  ;;  %v2969_v36 = vpack.c.bf16 %v105_v34, %v104_v33  ;;  %v213_v38 = vld [vmem:[#allocation3 + $0xe8] sm:$0xff]  ;;  %v106_v39 = vld [vmem:[#allocation3 + $0x60] sm:$0xff]  ;;  %v214_v43 = vld [vmem:[#allocation3 + $0xf0] sm:$0xff]  ;;  %p3432_p11 = por %p3431_p10, %p3430_p9 }
  0x1d   :  { %2958 = vmatprep.subr.bf16.mxu0 %v2957_v17  ;;  %v107_v40 = vld [vmem:[#allocation3 + $0x68] sm:$0xff]  ;;  %v3005_v41 = vpack.c.bf16 %v213_v38, %v212_v37  ;;  %v215_v44 = vld [vmem:[#allocation3 + $0xf8] sm:$0xff]  ;;  %v108_v45 = vld [vmem:[#allocation3 + $0x70] sm:$0xff] }
  0x1e   :  { %v2973_v42 = vpack.c.bf16 %v107_v40, %v106_v39  ;;  %v109_v46 = vld [vmem:[#allocation3 + $0x78] sm:$0xff]  ;;  %v3009_v47 = vpack.c.bf16 %v215_v44, %v214_v43  ;;  %v3509_v49 = vld [vmem:[%s3979_s1 + $0x8] sm:$0xff]  ;;  %v3514_v50 = vld [vmem:[%s3979_s1 + $0x10] sm:$0xff]  ;;  %p3433_p12 = pnand %p3432_p11, %p3426_p8 }
  0x1f   :  { %2992 = vmatpush3.bf16.msra.mxu1 %v2989_v16  ;;  %v2977_v48 = vpack.c.bf16 %v109_v46, %v108_v45  ;;  %v3522_v51 = vld [vmem:[%s3979_s1 + $0x18] sm:$0xff]  ;;  %v2135_v52 = vld [vmem:[%s3981_s3 + $0x1] ss:$0 sm:$0xff]  ;;  %v3533_v54 = vld [vmem:[%s3981_s3] ss:$0 sm:$0xff]  ;;  %s3454_s1 = smov 32  }
  0x20   :  { %2960 = vmatpush3.bf16.msra.mxu0 %v2957_v17  ;;  %2994 = vmatprep.subr.bf16.mxu1 %v2993_v22  ;;  %v306_v16 = vld [vmem:[#allocation3 + $0x100] sm:$0xff]  ;;  %v307_v17 = vld [vmem:[#allocation3 + $0x108] sm:$0xff] }
  0x21   :  { %2962 = vmatprep.subr.bf16.mxu0 %v2961_v23  ;;  %v3014_v19 = vpack.c.bf16 %v307_v17, %v306_v16 }
  0x23   :  { %2996 = vmatpush3.bf16.msra.mxu1 %v2993_v22  ;;  %v308_v22 = vld [vmem:[#allocation3 + $0x110] sm:$0xff] }
  0x24   :  { %2964 = vmatpush3.bf16.msra.mxu0 %v2961_v23  ;;  %2998 = vmatprep.subr.bf16.mxu1 %v2997_v29  ;;  %v309_v23 = vld [vmem:[#allocation3 + $0x118] sm:$0xff] }
  0x25   :  { %2966 = vmatprep.subr.bf16.mxu0 %v2965_v30  ;;  %v3017_v24 = vpack.c.bf16 %v309_v23, %v308_v22 }
  0x27   :  { %3000 = vmatpush3.bf16.msra.mxu1 %v2997_v29 }
  0x28   :  { %2968 = vmatpush3.bf16.msra.mxu0 %v2965_v30  ;;  %3002 = vmatprep.subr.bf16.mxu1 %v3001_v35 }
  0x29   :  { %2970 = vmatprep.subr.bf16.mxu0 %v2969_v36 }
  0x2b   :  { %3004 = vmatpush3.bf16.msra.mxu1 %v3001_v35 }
  0x2c   :  { %2972 = vmatpush3.bf16.msra.mxu0 %v2969_v36  ;;  %3006 = vmatprep.subr.bf16.mxu1 %v3005_v41 }
  0x2d   :  { %2974 = vmatprep.subr.bf16.mxu0 %v2973_v42 }
  0x2f   :  { %3008 = vmatpush3.bf16.msra.mxu1 %v3005_v41 }
  0x30   :  { %2976 = vmatpush3.bf16.msra.mxu0 %v2973_v42  ;;  %3010 = vmatprep.subr.bf16.mxu1 %v3009_v47 }
  0x31   :  { %2978 = vmatprep.subr.bf16.mxu0 %v2977_v48 }
  0x33   :  { %3012 = vmatpush3.bf16.msra.mxu1 %v3009_v47 }
  0x34   :  { %2980 = vmatpush3.bf16.msra.mxu0 %v2977_v48  ;;  %3019 = vmatprep.subr.bf16.mxu1 %v3457_v18 }
  0x35   :  { %3013 = vmatprep.subr.bf16.mxu0 %v3457_v18 }
  0x36   :  { %2491 = vmatmul.mubr.f32.vlgmr.msra.gmra.mrb[0].mxu1 %v3509_v49 }
  0x37   :  { %2453 = vmatmul.mubr.f32.vlgmr.msra.gmra.mrb[0].mxu0 %v3509_v49  ;;  %2493 = vmatprep.mubr.f32.mxu1 %v3514_v50 }
  0x38   :  { %2455 = vmatprep.mubr.f32.mxu0 %v3514_v50  ;;  %3015 = vmatpush3.bf16.msra.mxu0 %v3014_v19 }
  0x39   :  { %3021 = vmatpush3.bf16.msra.mxu1 %v3014_v19  ;;  %3016 = vmatprep.subr.bf16.mxu0 %v3457_v18 }
  0x3a   :  { %2494 = vmatmul.mubr.f32.gmra.mrb[2].mxu1 %v3522_v51  ;;  %3022 = vmatprep.subr.bf16.mxu1 %v3457_v18 }
  0x3b   :  { %2456 = vmatmul.mubr.f32.gmra.mrb[2].mxu0 %v3522_v51  ;;  %2515 = vmatprep.mubr.msk.f32.mxu1 %vm3458_vm0, %v3459_v25 }
  0x3c   :  { %3018 = vmatpush3.bf16.msra.mxu0 %v3017_v24  ;;  %2504 = vmatprep.mubr.msk.f32.mxu0 %vm3458_vm0, %v3459_v25 }
  0x3d   :  { %3024 = vmatpush3.bf16.msra.mxu1 %v3017_v24  ;;  %3025 = vmatprep.subr.bf16.mxu0 %v3457_v18 }
  0x3e   :  { %3031 = vmatprep.subr.bf16.mxu1 %v3457_v18 }
 0x109   :  { %v2492_v53 = vpop.f32.mrb[0].mxu1 }
 0x10a   :  { %v3535_v55 = vadd.f32 %v2492_v53, %v2135_v52  ;;  %v287_v56 = vpop.f32.mrb[1].mxu1  ;;  %v3537_v57 = vpop.f32.mrb[0].mxu0 }
 0x10b   :  { %v3539_v58 = vadd.f32 %v2135_v52, %v287_v56  ;;  %v181_v59 = vpop.f32.mrb[1].mxu0  ;;  %v187_v36 = vadd.f32 %v3537_v57, %v3533_v54 }
 0x10c   :  { %v182_v60 = vadd.f32 %v3533_v54, %v181_v59 }
 0x10d   :  { %v2495_v61 = vpop.f32.mrb[2].mxu1 }
 0x10e   :  { %v303_v62 = vadd.f32 %v2495_v61, %v2135_v52  ;;  %v297_v63 = vpop.f32.mrb[3].mxu1  ;;  %v3566_v27 = vpop.f32.mrb[2].mxu0 }
 0x10f   :  { %v3542_v0 = vadd.f32 %v2135_v52, %v297_v63  ;;  %v3568_v28 = vpop.f32.mrb[3].mxu0 }
 0x110   :  { %v311_v1 = vadd.f32 %v303_v62, %v182_v60 }
 0x112   :  { %3333 = vtanh.f32 %v311_v1  ;;  %v2136_v3 = vmul.f32 -1.442695, %v311_v1 }
 0x114   :  { %3335 = vpow2.f32 %v2136_v3 }
 0x11c   :  { %v3334_v2 = vpop.eup %3333 }
 0x11d   :  { %321 = vrot.lane.b32.xlu0 %v3334_v2, %s3454_s1 }
 0x11e   :  { %v3336_v4 = vpop.eup %3335 }
 0x11f   :  { %v315_v5 = vadd.f32 1.0, %v3336_v4 }
 0x121   :  { %330 = vrot.lane.b32.xlu0 %v3334_v2, %s3455_s14  ;;  %3337 = vrcp.f32 %v315_v5 }
 0x12b   :  { %v3338_v6 = vpop.eup %3337 }
 0x12c   :  { %v319_v11 = vmul.f32 0.0, %v3338_v6 }
 0x18f   :  { %v322_v7 = vpop.permute.xlu0 %321 }
 0x190   :  { %v324_v8 = vmul.f32 %v3338_v6, %v322_v7  ;;  %v192_v7 = vadd.f32 %v3533_v54, %v3568_v28 }
 0x192   :  { %326 = vrot.lane.b32.xlu1 %v324_v8, %s3456_s15 }
 0x193   :  { %v331_v9 = vpop.permute.xlu0 %330 }
 0x194   :  { %v333_v10 = vmul.f32 %v3338_v6, %v331_v9 }
 0x196   :  { %335 = vrot.lane.b32.xlu1 %v333_v10, %s3456_s15 }
 0x204   :  { %v327_v12 = vpop.permute.xlu1 %326 }
 0x205   :  { %v3548_v13 = vadd.f32 %v327_v12, %v319_v11 }
 0x207   :  { %3339 = vtanh.f32 %v3548_v13 }
 0x208   :  { %v336_v14 = vpop.permute.xlu1 %335 }
 0x209   :  { %v3551_v15 = vadd.f32 %v336_v14, %v319_v11 }
 0x20b   :  { %3341 = vtanh.f32 %v3551_v15 }
 0x211   :  { %v3340_v20 = vpop.eup %3339 }
 0x212   :  { %341 = vrot.lane.b32.xlu0 %v3340_v20, %s3456_s15 }
 0x215   :  { %v3342_v21 = vpop.eup %3341 }
 0x216   :  { %347 = vrot.lane.b32.xlu1 %v3342_v21, %s3456_s15 }
 0x284   :  { %v342_v29 = vpop.permute.xlu0 %341 }
 0x285   :  { %v344_v30 = vmul.f32 %v3338_v6, %v342_v29 }
 0x287   :  { %352 = vrot.lane.b32.xlu0 %v344_v30, %s3460_s16 }
 0x288   :  { %v348_v31 = vpop.permute.xlu1 %347 }
 0x289   :  { %v350_v32 = vmul.f32 %v3338_v6, %v348_v31 }
 0x28b   :  { %358 = vrot.lane.b32.xlu1 %v350_v32, %s3455_s14 }
 0x2f9   :  { %v353_v33 = vpop.permute.xlu0 %352 }
 0x2fa   :  { %356 = vst.msk [vmem:[#allocation2] sm:$0xff] %vm355_vm1, %v353_v33 }
 0x2fd   :  { %v359_v34 = vpop.permute.xlu1 %358 }
 0x2fe   :  { %363 = vst.msk [vmem:[#allocation2 + $0x18] sm:$0xff] %vm362_vm2, %v359_v34  ;;  %v364_v35 = vsel %vm355_vm1, %v353_v33, %v359_v34 }
 0x2ff   :  { %2505 = vmatmul.mubr.msk.f32.vlgmr.msra.gmra.mrb[4].mxu0 %vm365_vm3, %v364_v35 }
 0x300   :  { %3027 = vmatpush3.bf16.msra.mxu0 %v3014_v19  ;;  %2526 = vmatprep.mubr.msk.f32.mxu0 %vm3458_vm0, %v3459_v25 }
 0x301   :  { %3028 = vmatprep.subr.bf16.mxu0 %v3457_v18 }
 0x304   :  { %3030 = vmatpush3.bf16.msra.mxu0 %v3017_v24 }
 0x305   :  { %3055 = vmatprep.subr.bf16.mxu0 %v3457_v18 }
 0x3d2   :  { %v435_v37 = vpop.f32.mrb[4].mxu0 }
 0x3d3   :  { %v436_v38 = vadd.f32 %v435_v37, %v187_v36  ;;  %v2506_v39 = vpop.f32.mrb[5].mxu0 }
 0x3d4   :  { %v197_v39 = vadd.f32 %v3566_v27, %v3533_v54 }
 0x3d5   :  { %v439_v40 = vadd.f32 %v436_v38, %v3542_v0 }
 0x3d7   :  { %3343 = vtanh.f32 %v439_v40  ;;  %v2138_v42 = vmul.f32 -1.442695, %v439_v40 }
 0x3d9   :  { %3345 = vpow2.f32 %v2138_v42 }
 0x3e1   :  { %v3344_v41 = vpop.eup %3343 }
 0x3e2   :  { %459 = vrot.lane.b32.xlu1 %v3344_v41, %s3455_s14  ;;  %449 = vrot.lane.b32.xlu0 %v3344_v41, %s3454_s1 }
 0x3e3   :  { %v3346_v43 = vpop.eup %3345 }
 0x3e4   :  { %v443_v44 = vadd.f32 1.0, %v3346_v43 }
 0x3e6   :  { %3347 = vrcp.f32 %v443_v44 }
 0x3f0   :  { %v3348_v45 = vpop.eup %3347 }
 0x3f1   :  { %v458_v53 = vmul.f32 %v3348_v45, %v3551_v15  ;;  %v447_v56 = vmul.f32 %v3348_v45, %v3548_v13 }
 0x454   :  { %v460_v46 = vpop.permute.xlu1 %459  ;;  %v450_v47 = vpop.permute.xlu0 %449 }
 0x455   :  { %v462_v48 = vmul.f32 %v3348_v45, %v460_v46  ;;  %v452_v52 = vmul.f32 %v3348_v45, %v450_v47 }
 0x457   :  { %464 = vrot.lane.b32.xlu1 %v462_v48, %s3456_s15  ;;  %454 = vrot.lane.b32.xlu0 %v452_v52, %s3456_s15 }
 0x4c9   :  { %v465_v57 = vpop.permute.xlu1 %464  ;;  %v455_v59 = vpop.permute.xlu0 %454 }
 0x4ca   :  { %v467_v60 = vadd.f32 %v465_v57, %v458_v53  ;;  %v457_v61 = vadd.f32 %v455_v59, %v447_v56 }
 0x4cc   :  { %3349 = vtanh.f32 %v467_v60 }
 0x4cd   :  { %3351 = vtanh.f32 %v457_v61 }
 0x4d6   :  { %v3350_v62 = vpop.eup %3349 }
 0x4d7   :  { %v3352_v63 = vpop.eup %3351  ;;  %476 = vrot.lane.b32.xlu1 %v3350_v62, %s3456_s15 }
 0x4d8   :  { %470 = vrot.lane.b32.xlu0 %v3352_v63, %s3456_s15 }
 0x549   :  { %v477_v0 = vpop.permute.xlu1 %476 }
 0x54a   :  { %v479_v1 = vmul.f32 %v3348_v45, %v477_v0  ;;  %v471_v2 = vpop.permute.xlu0 %470 }
 0x54b   :  { %v473_v3 = vmul.f32 %v3348_v45, %v471_v2 }
 0x54c   :  { %487 = vrot.lane.b32.xlu1 %v479_v1, %s3455_s14 }
 0x54d   :  { %481 = vrot.lane.b32.xlu0 %v473_v3, %s3460_s16 }
 0x5be   :  { %v488_v4 = vpop.permute.xlu1 %487 }
 0x5bf   :  { %491 = vst.msk [vmem:[#allocation2 + $0x10] sm:$0xff] %vm362_vm2, %v488_v4  ;;  %v482_v5 = vpop.permute.xlu0 %481 }
 0x5c0   :  { %485 = vst.msk [vmem:[#allocation2 + $0x8] sm:$0xff] %vm355_vm1, %v482_v5  ;;  %v492_v6 = vsel %vm355_vm1, %v482_v5, %v488_v4  ;;  %v2143_v5 = vld [vmem:[%s3981_s3 + $0x3] ss:$0 sm:$0xff] }
 0x5c1   :  { %2516 = vmatmul.mubr.msk.f32.vlgmr.msra.gmra.mrb[4].mxu1 %vm365_vm3, %v492_v6 }
 0x5c2   :  { %2561 = vmatprep.mubr.msk.f32.mxu1 %vm3458_vm0, %v3459_v25 }
 0x694   :  { %v562_v8 = vpop.f32.mrb[4].mxu1 }
 0x695   :  { %v563_v9 = vadd.f32 %v562_v8, %v192_v7  ;;  %v2517_v10 = vpop.f32.mrb[5].mxu1 }
 0x697   :  { %v566_v11 = vadd.f32 %v563_v9, %v3535_v55 }
 0x699   :  { %3353 = vtanh.f32 %v566_v11  ;;  %v2140_v13 = vmul.f32 -1.442695, %v566_v11  ;;  %v33_v11 = vld [vmem:[%s3978_s0] sm:$0xff] }
 0x69b   :  { %3355 = vpow2.f32 %v2140_v13  ;;  %v38_v13 = vsel %vm37_vm4, %v33_v11, 0.0 }
 0x6a3   :  { %v3354_v12 = vpop.eup %3353 }
 0x6a4   :  { %586 = vrot.lane.b32.xlu1 %v3354_v12, %s3455_s14  ;;  %576 = vrot.lane.b32.xlu0 %v3354_v12, %s3454_s1  ;;  %v35_v12 = vcombine.high %v33_v11, %v33_v11  ;;  %v976_v11 = vld [vmem:[#allocation3 + $0x1e0] sm:$0xff] }
 0x6a5   :  { %v3356_v14 = vpop.eup %3355 }
 0x6a6   :  { %v570_v15 = vadd.f32 1.0, %v3356_v14  ;;  %v39_v14 = vsel %vm37_vm4, %v35_v12, 0.0 }
 0x6a8   :  { %3357 = vrcp.f32 %v570_v15  ;;  %v40_v15 = vadd.f32 %v39_v14, %v38_v13 }
 0x6b2   :  { %v3358_v16 = vpop.eup %3357 }
 0x6b3   :  { %v585_v55 = vmul.f32 %v3358_v16, %v467_v60  ;;  %v574_v22 = vmul.f32 %v3358_v16, %v457_v61 }
 0x716   :  { %v587_v17 = vpop.permute.xlu1 %586  ;;  %v577_v19 = vpop.permute.xlu0 %576 }
 0x717   :  { %v589_v20 = vmul.f32 %v3358_v16, %v587_v17  ;;  %v579_v21 = vmul.f32 %v3358_v16, %v577_v19 }
 0x719   :  { %591 = vrot.lane.b32.xlu1 %v589_v20, %s3456_s15  ;;  %581 = vrot.lane.b32.xlu0 %v579_v21, %s3456_s15 }
 0x78b   :  { %v592_v23 = vpop.permute.xlu1 %591  ;;  %v582_v24 = vpop.permute.xlu0 %581 }
 0x78c   :  { %v594_v28 = vadd.f32 %v592_v23, %v585_v55  ;;  %v584_v29 = vadd.f32 %v582_v24, %v574_v22  ;;  %v56_v23 = vld [vmem:[%s3978_s0 + $0x8] sm:$0xff] }
 0x78e   :  { %3359 = vtanh.f32 %v594_v28 }
 0x78f   :  { %3361 = vtanh.f32 %v584_v29 }
 0x798   :  { %v3360_v30 = vpop.eup %3359 }
 0x799   :  { %v3362_v31 = vpop.eup %3361  ;;  %603 = vrot.lane.b32.xlu1 %v3360_v30, %s3456_s15  ;;  %v58_v30 = vcombine.high %v56_v23, %v56_v23 }
 0x79a   :  { %597 = vrot.lane.b32.xlu0 %v3362_v31, %s3456_s15 }
 0x80b   :  { %v604_v32 = vpop.permute.xlu1 %603 }
 0x80c   :  { %v606_v33 = vmul.f32 %v3358_v16, %v604_v32  ;;  %v598_v34 = vpop.permute.xlu0 %597 }
 0x80d   :  { %v600_v35 = vmul.f32 %v3358_v16, %v598_v34  ;;  %v73_v16 = vld [vmem:[%s3978_s0 + $0x10] sm:$0xff]  ;;  %v61_v34 = vsel %vm37_vm4, %v58_v30, 0.0 }
 0x80e   :  { %613 = vrot.lane.b32.xlu1 %v606_v33, %s3455_s14  ;;  %v75_v17 = vcombine.high %v73_v16, %v73_v16  ;;  %v77_v19 = vsel %vm37_vm4, %v73_v16, 0.0  ;;  %v60_v33 = vsel %vm37_vm4, %v56_v23, 0.0  ;;  %v978_v16 = vld [vmem:[#allocation3 + $0x1f0] sm:$0xff] }
 0x80f   :  { %608 = vrot.lane.b32.xlu0 %v600_v35, %s3460_s16 }
 0x810   :  { %v78_v20 = vsel %vm37_vm4, %v75_v17, 0.0 }
 0x811   :  { %v79_v21 = vadd.f32 %v78_v20, %v77_v19 }
 0x880   :  { %v614_v36 = vpop.permute.xlu1 %613 }
 0x881   :  { %616 = vst.msk [vmem:[#allocation2 + $0x8] sm:$0xff] %vm362_vm2, %v614_v36  ;;  %v609_v37 = vpop.permute.xlu0 %608 }
 0x882   :  { %611 = vst.msk [vmem:[#allocation2 + $0x10] sm:$0xff] %vm355_vm1, %v609_v37  ;;  %v617_v38 = vsel %vm355_vm1, %v609_v37, %v614_v36  ;;  %v62_v36 = vadd.f32 %v61_v34, %v60_v33  ;;  %v878_v37 = vld [vmem:[#allocation3 + $0x128] sm:$0xff] }
 0x883   :  { %2527 = vmatmul.mubr.msk.f32.vlgmr.msra.gmra.mrb[6].mxu0 %vm365_vm3, %v617_v38  ;;  %v879_v38 = vld [vmem:[#allocation3 + $0x130] sm:$0xff] }
 0x884   :  { %2596 = vmatprep.mubr.msk.f32.mxu0 %vm3458_vm0, %v3459_v25 }
 0x888   :  { %v743_v7 = vld [vmem:[#allocation2 + $0x8] sm:$0xff] }
 0x889   :  { %v744_v4 = vld [vmem:[#allocation2 + $0x10] sm:$0xff]  ;;  %v752_v9 = vmul.f32 %v2143_v5, %v743_v7 }
 0x88a   :  { %v753_v6 = vmul.f32 %v2143_v5, %v744_v4  ;;  %v972_v4 = vld [vmem:[#allocation3 + $0x1c0] sm:$0xff]  ;;  %v974_v7 = vld [vmem:[#allocation3 + $0x1d0] sm:$0xff] }
 0x88b   :  { %v758_v10 = vsel %vm365_vm3, %v752_v9, 0.0 }
 0x88c   :  { %v761_v8 = vsel %vm365_vm3, %v753_v6, 0.0  ;;  %v973_v6 = vld [vmem:[#allocation3 + $0x1c8] sm:$0xff] }
 0x88d   :  { %v3062_v9 = vpack.c.bf16 %v974_v7, %v973_v6 }
 0x956   :  { %v687_v40 = vpop.f32.mrb[6].mxu0 }
 0x957   :  { %v688_v41 = vadd.f32 %v687_v40, %v197_v39  ;;  %v2528_v42 = vpop.f32.mrb[7].mxu0  ;;  %v880_v39 = vld [vmem:[#allocation3 + $0x138] sm:$0xff]  ;;  %v3032_v40 = vpack.c.bf16 %v879_v38, %v878_v37 }
 0x959   :  { %v691_v43 = vadd.f32 %v688_v41, %v3539_v58  ;;  %v881_v41 = vld [vmem:[#allocation3 + $0x140] sm:$0xff]  ;;  %3033 = vmatpush3.bf16.msra.mxu1 %v3032_v40 }
 0x95a   :  { %v3035_v42 = vpack.c.bf16 %v881_v41, %v880_v39  ;;  %3034 = vmatprep.subr.bf16.mxu1 %v3457_v18 }
 0x95b   :  { %3363 = vtanh.f32 %v691_v43  ;;  %v2142_v45 = vmul.f32 -1.442695, %v691_v43  ;;  %v882_v43 = vld [vmem:[#allocation3 + $0x148] sm:$0xff] }
 0x95d   :  { %3365 = vpow2.f32 %v2142_v45  ;;  %3036 = vmatpush3.bf16.msra.mxu1 %v3035_v42 }
 0x95e   :  { %3037 = vmatprep.subr.bf16.mxu1 %v3457_v18 }
 0x965   :  { %v3364_v44 = vpop.eup %3363 }
 0x966   :  { %701 = vrot.lane.b32.xlu1 %v3364_v44, %s3454_s1  ;;  %711 = vrot.lane.b32.xlu0 %v3364_v44, %s3455_s14  ;;  %v883_v44 = vld [vmem:[#allocation3 + $0x150] sm:$0xff] }
 0x967   :  { %v3366_v46 = vpop.eup %3365  ;;  %v3038_v45 = vpack.c.bf16 %v883_v44, %v882_v43 }
 0x968   :  { %v695_v47 = vadd.f32 1.0, %v3366_v46  ;;  %v884_v46 = vld [vmem:[#allocation3 + $0x158] sm:$0xff] }
 0x969   :  { %3039 = vmatpush3.bf16.msra.mxu1 %v3038_v45 }
 0x96a   :  { %3367 = vrcp.f32 %v695_v47  ;;  %v885_v47 = vld [vmem:[#allocation3 + $0x160] sm:$0xff]  ;;  %3040 = vmatprep.subr.bf16.mxu1 %v3457_v18 }
 0x974   :  { %v3368_v48 = vpop.eup %3367 }
 0x975   :  { %v710_v58 = vmul.f32 %v3368_v48, %v594_v28  ;;  %v699_v56 = vmul.f32 %v3368_v48, %v584_v29 }
 0x9d8   :  { %v702_v52 = vpop.permute.xlu1 %701  ;;  %v712_v53 = vpop.permute.xlu0 %711 }
 0x9d9   :  { %v704_v54 = vmul.f32 %v3368_v48, %v702_v52  ;;  %v714_v27 = vmul.f32 %v3368_v48, %v712_v53  ;;  %v886_v52 = vld [vmem:[#allocation3 + $0x168] sm:$0xff]  ;;  %v887_v53 = vld [vmem:[#allocation3 + $0x170] sm:$0xff] }
 0x9db   :  { %716 = vrot.lane.b32.xlu0 %v714_v27, %s3456_s15  ;;  %706 = vrot.lane.b32.xlu1 %v704_v54, %s3456_s15  ;;  %v3044_v54 = vpack.c.bf16 %v887_v53, %v886_v52  ;;  %v888_v27 = vld [vmem:[#allocation3 + $0x178] sm:$0xff] }
 0xa4d   :  { %v717_v57 = vpop.permute.xlu0 %716  ;;  %v707_v59 = vpop.permute.xlu1 %706 }
 0xa4e   :  { %v719_v60 = vadd.f32 %v717_v57, %v710_v58  ;;  %v709_v61 = vadd.f32 %v707_v59, %v699_v56  ;;  %v889_v58 = vld [vmem:[#allocation3 + $0x180] sm:$0xff]  ;;  %v890_v57 = vld [vmem:[#allocation3 + $0x188] sm:$0xff]  ;;  %v891_v59 = vld [vmem:[#allocation3 + $0x190] sm:$0xff] }
 0xa4f   :  { %v3047_v56 = vpack.c.bf16 %v889_v58, %v888_v27 }
 0xa50   :  { %3369 = vtanh.f32 %v719_v60  ;;  %v3050_v60 = vpack.c.bf16 %v891_v59, %v890_v57 }
 0xa51   :  { %3371 = vtanh.f32 %v709_v61  ;;  %v892_v61 = vld [vmem:[#allocation3 + $0x198] sm:$0xff] }
 0xa5a   :  { %v3370_v62 = vpop.eup %3369 }
 0xa5b   :  { %v3372_v63 = vpop.eup %3371  ;;  %728 = vrot.lane.b32.xlu0 %v3370_v62, %s3456_s15  ;;  %v893_v62 = vld [vmem:[#allocation3 + $0x1a0] sm:$0xff] }
 0xa5c   :  { %722 = vrot.lane.b32.xlu1 %v3372_v63, %s3456_s15  ;;  %v3053_v63 = vpack.c.bf16 %v893_v62, %v892_v61 }
 0xacd   :  { %v729_v0 = vpop.permute.xlu0 %728 }
 0xace   :  { %v731_v1 = vmul.f32 %v3368_v48, %v729_v0  ;;  %v723_v2 = vpop.permute.xlu1 %722  ;;  %v969_v0 = vld [vmem:[#allocation3 + $0x1a8] sm:$0xff] }
 0xacf   :  { %v725_v3 = vmul.f32 %v3368_v48, %v723_v2  ;;  %v3041_v48 = vpack.c.bf16 %v885_v47, %v884_v46  ;;  %v971_v2 = vld [vmem:[#allocation3 + $0x1b8] sm:$0xff] }
 0xad0   :  { %738 = vrot.lane.b32.xlu0 %v731_v1, %s3455_s14  ;;  %v970_v1 = vld [vmem:[#allocation3 + $0x1b0] sm:$0xff] }
 0xad1   :  { %733 = vrot.lane.b32.xlu1 %v725_v3, %s3460_s16  ;;  %3042 = vmatpush3.bf16.msra.mxu1 %v3041_v48  ;;  %v3056_v3 = vpack.c.bf16 %v970_v1, %v969_v0 }
 0xad2   :  { %3043 = vmatprep.subr.bf16.mxu1 %v3457_v18 }
 0xad3   :  { %3057 = vmatpush3.bf16.msra.mxu0 %v3056_v3 }
 0xad4   :  { %3058 = vmatprep.subr.bf16.mxu0 %v3457_v18 }
 0xad5   :  { %3045 = vmatpush3.bf16.msra.mxu1 %v3044_v54 }
 0xad6   :  { %3046 = vmatprep.subr.bf16.mxu1 %v3457_v18 }
 0xad9   :  { %3048 = vmatpush3.bf16.msra.mxu1 %v3047_v56 }
 0xada   :  { %3049 = vmatprep.subr.bf16.mxu1 %v3457_v18 }
 0xadd   :  { %3051 = vmatpush3.bf16.msra.mxu1 %v3050_v60 }
 0xade   :  { %3052 = vmatprep.subr.bf16.mxu1 %v3457_v18 }
 0xae1   :  { %3054 = vmatpush3.bf16.msra.mxu1 %v3053_v63 }
 0xae2   :  { %3079 = vmatprep.subr.bf16.mxu1 %v3457_v18 }
 0xaef   :  { %762 = vadd.xlane.f32.xlu0 %v761_v8 }
 0xaf5   :  { %759 = vadd.xlane.f32.xlu1 %v758_v10  ;;  %v975_v10 = vld [vmem:[#allocation3 + $0x1d8] sm:$0xff] }
 0xaf6   :  { %v3065_v14 = vpack.c.bf16 %v976_v11, %v975_v10 }
 0xaf9   :  { %41 = vadd.xlane.f32.xlu1 %v40_v15  ;;  %v977_v15 = vld [vmem:[#allocation3 + $0x1e8] sm:$0xff] }
 0xafa   :  { %v3068_v20 = vpack.c.bf16 %v978_v16, %v977_v15 }
 0xafd   :  { %80 = vadd.xlane.f32.xlu1 %v79_v21  ;;  %v979_v21 = vld [vmem:[#allocation3 + $0x1f8] sm:$0xff] }
 0xb42   :  { %v739_v55 = vpop.permute.xlu0 %738 }
 0xb43   :  { %741 = vst.msk [vmem:[#allocation2] sm:$0xff] %vm362_vm2, %v739_v55  ;;  %v734_v22 = vpop.permute.xlu1 %733  ;;  %v980_v55 = vld [vmem:[#allocation3 + $0x200] sm:$0xff] }
 0xb44   :  { %736 = vst.msk [vmem:[#allocation2 + $0x18] sm:$0xff] %vm355_vm1, %v734_v22 }
 0xb4a   :  { %v742_v24 = vld [vmem:[#allocation2] sm:$0xff] }
 0xb4b   :  { %v751_v28 = vmul.f32 %v2143_v5, %v742_v24  ;;  %v745_v29 = vld [vmem:[#allocation2 + $0x18] sm:$0xff]  ;;  %v3071_v24 = vpack.c.bf16 %v980_v55, %v979_v21 }
 0xb4c   :  { %v754_v32 = vmul.f32 %v2143_v5, %v745_v29  ;;  %v3059_v5 = vpack.c.bf16 %v972_v4, %v971_v2  ;;  %v982_v29 = vld [vmem:[#allocation3 + $0x210] sm:$0xff] }
 0xb4d   :  { %v755_v31 = vsel %vm365_vm3, %v751_v28, 0.0  ;;  %v981_v28 = vld [vmem:[#allocation3 + $0x208] sm:$0xff] }
 0xb4e   :  { %756 = vadd.xlane.f32.xlu0 %v755_v31  ;;  %v764_v35 = vsel %vm365_vm3, %v754_v32, 0.0  ;;  %3060 = vmatpush3.bf16.msra.mxu0 %v3059_v5  ;;  %v3074_v32 = vpack.c.bf16 %v982_v29, %v981_v28 }
 0xb4f   :  { %3061 = vmatprep.subr.bf16.mxu0 %v3457_v18 }
 0xb52   :  { %765 = vadd.xlane.f32.xlu0 %v764_v35  ;;  %3063 = vmatpush3.bf16.msra.mxu0 %v3062_v9 }
 0xb53   :  { %3064 = vmatprep.subr.bf16.mxu0 %v3457_v18 }
 0xb56   :  { %63 = vadd.xlane.f32.xlu0 %v62_v36  ;;  %3066 = vmatpush3.bf16.msra.mxu0 %v3065_v14 }
 0xb57   :  { %3067 = vmatprep.subr.bf16.mxu0 %v3457_v18 }
 0xb5a   :  { %3069 = vmatpush3.bf16.msra.mxu0 %v3068_v20 }
 0xb5b   :  { %3070 = vmatprep.subr.bf16.mxu0 %v3457_v18 }
 0xb5e   :  { %3072 = vmatpush3.bf16.msra.mxu0 %v3071_v24 }
 0xb5f   :  { %3073 = vmatprep.subr.bf16.mxu0 %v3457_v18 }
 0xb62   :  { %3075 = vmatpush3.bf16.msra.mxu0 %v3074_v32 }
 0xb63   :  { %3076 = vmatprep.subr.bf16.mxu0 %v3457_v18 }
 0xb7c   :  { %v763_v12 = vpop.xlane.xlu0 %762 }
 0xb7d   :  { %v779_v17 = vrot.slane %v763_v12, 4 }
 0xb7f   :  { %v780_v22 = vmax.f32 %v763_v12, %v779_v17 }
 0xb81   :  { %v781_v30 = vrot.slane %v780_v22, 2 }
 0xb82   :  { %v760_v8 = vpop.xlane.xlu1 %759 }
 0xb83   :  { %v773_v13 = vrot.slane %v760_v8, 4  ;;  %v782_v33 = vmax.f32 %v780_v22, %v781_v30 }
 0xb85   :  { %v774_v19 = vmax.f32 %v760_v8, %v773_v13  ;;  %v783_v35 = vrot.slane %v782_v33, 1 }
 0xb87   :  { %v775_v23 = vrot.slane %v774_v19, 2  ;;  %v784_v37 = vmax.f32 %v782_v33, %v783_v35 }
 0xb89   :  { %v776_v31 = vmax.f32 %v774_v19, %v775_v23  ;;  %v793_v39 = vsub.f32 %v763_v12, %v784_v37 }
 0xb8b   :  { %v777_v34 = vrot.slane %v776_v31, 1  ;;  %v799_v41 = vmul.f32 1.442695, %v793_v39 }
 0xb8d   :  { %v778_v36 = vmax.f32 %v776_v31, %v777_v34 }
 0xb8f   :  { %v792_v38 = vsub.f32 %v760_v8, %v778_v36  ;;  %v42_v36 = vpop.xlane.xlu1 %41 }
 0xb91   :  { %v797_v40 = vmul.f32 1.442695, %v792_v38  ;;  %v44_v38 = vmul.f32 0.00390625, %v42_v36  ;;  %v1091_v36 = vld [vmem:[#allocation3 + $0x2c0] sm:$0xff] }
 0xb93   :  { %3373 = vpow2.f32 %v797_v40  ;;  %v2130_v40 = vld [vmem:[#allocation3 + $0x120] ss:$0 sm:$0xff] }
 0xb94   :  { %3375 = vpow2.f32 %v799_v41 }
 0xb9d   :  { %v3374_v42 = vpop.eup %3373 }
 0xb9e   :  { %v3376_v43 = vpop.eup %3375  ;;  %v809_v44 = vrot.slane %v3374_v42, 4 }
 0xb9f   :  { %v815_v47 = vrot.slane %v3376_v43, 4 }
 0xba0   :  { %v810_v52 = vadd.f32 %v3374_v42, %v809_v44 }
 0xba1   :  { %v816_v58 = vadd.f32 %v3376_v43, %v815_v47 }
 0xba2   :  { %v811_v59 = vrot.slane %v810_v52, 2 }
 0xba3   :  { %v817_v62 = vrot.slane %v816_v58, 2 }
 0xba4   :  { %v812_v1 = vadd.f32 %v811_v59, %v810_v52  ;;  %v81_v52 = vpop.xlane.xlu1 %80 }
 0xba5   :  { %v818_v4 = vadd.f32 %v817_v62, %v816_v58  ;;  %v82_v59 = vmul.f32 0.00390625, %v81_v52  ;;  %v1095_v52 = vld [vmem:[#allocation3 + $0x2e0] sm:$0xff] }
 0xba6   :  { %v813_v7 = vrot.slane %v812_v1, 1 }
 0xba7   :  { %v819_v9 = vrot.slane %v818_v4, 1 }
 0xba8   :  { %v814_v11 = vadd.f32 %v813_v7, %v812_v1 }
 0xba9   :  { %v820_v12 = vadd.f32 %v819_v9, %v818_v4 }
 0xbdb   :  { %v757_v45 = vpop.xlane.xlu0 %756 }
 0xbdc   :  { %v767_v46 = vrot.slane %v757_v45, 4 }
 0xbde   :  { %v768_v48 = vmax.f32 %v757_v45, %v767_v46  ;;  %v50_v46 = vmul.f32 %v2130_v40, %v44_v38  ;;  %v2145_v38 = vld [vmem:[%s3981_s3 + $0x5] ss:$0 sm:$0xff] }
 0xbdf   :  { %v766_v53 = vpop.xlane.xlu0 %765 }
 0xbe0   :  { %v769_v54 = vrot.slane %v768_v48, 2  ;;  %v785_v27 = vrot.slane %v766_v53, 4 }
 0xbe2   :  { %v770_v56 = vmax.f32 %v768_v48, %v769_v54  ;;  %v786_v57 = vmax.f32 %v766_v53, %v785_v27 }
 0xbe3   :  { %v64_v41 = vpop.xlane.xlu0 %63 }
 0xbe4   :  { %v771_v60 = vrot.slane %v770_v56, 1  ;;  %v787_v61 = vrot.slane %v786_v57, 2  ;;  %v65_v47 = vmul.f32 0.00390625, %v64_v41 }
 0xbe6   :  { %v772_v63 = vmax.f32 %v770_v56, %v771_v60  ;;  %v788_v0 = vmax.f32 %v786_v57, %v787_v61  ;;  %v2133_v61 = vld [vmem:[#allocation3 + $0x122] ss:$0 sm:$0xff] }
 0xbe7   :  { %v88_v4 = vmul.f32 %v2133_v61, %v82_v59  ;;  %v1100_v59 = vld [vmem:[#allocation3 + $0x308] sm:$0xff] }
 0xbe8   :  { %v791_v2 = vsub.f32 %v757_v45, %v772_v63  ;;  %v789_v3 = vrot.slane %v788_v0, 1 }
 0xbea   :  { %v795_v5 = vmul.f32 1.442695, %v791_v2  ;;  %v790_v6 = vmax.f32 %v788_v0, %v789_v3 }
 0xbec   :  { %3377 = vpow2.f32 %v795_v5  ;;  %v794_v8 = vsub.f32 %v766_v53, %v790_v6 }
 0xbee   :  { %v801_v10 = vmul.f32 1.442695, %v794_v8 }
 0xbf0   :  { %3379 = vpow2.f32 %v801_v10 }
 0xbf1   :  { %3381 = vrcp.f32 %v814_v11 }
 0xbf2   :  { %3383 = vrcp.f32 %v820_v12 }
 0xbf6   :  { %v3378_v13 = vpop.eup %3377 }
 0xbf7   :  { %v803_v14 = vrot.slane %v3378_v13, 4 }
 0xbf9   :  { %v804_v15 = vadd.f32 %v3378_v13, %v803_v14 }
 0xbfa   :  { %v3380_v16 = vpop.eup %3379 }
 0xbfb   :  { %v805_v17 = vrot.slane %v804_v15, 2  ;;  %v821_v19 = vrot.slane %v3380_v16, 4  ;;  %v3382_v20 = vpop.eup %3381 }
 0xbfc   :  { %v3384_v24 = vpop.eup %3383  ;;  %v832_v28 = vmul.f32 %v3382_v20, %v3374_v42 }
 0xbfd   :  { %v806_v21 = vadd.f32 %v805_v17, %v804_v15  ;;  %v822_v55 = vadd.f32 %v3380_v16, %v821_v19  ;;  %v833_v32 = vmul.f32 %v3384_v24, %v3376_v43  ;;  %v2132_v43 = vld [vmem:[#allocation3 + $0x121] ss:$0 sm:$0xff] }
 0xbfe   :  { %v836_v33 = vmul.f32 %v832_v28, %v3509_v49  ;;  %v2131_v49 = vld [vmem:[%s3981_s3 + $0x2] ss:$0 sm:$0xff]  ;;  %v71_v57 = vmul.f32 %v2132_v43, %v65_v47  ;;  %v2144_v28 = vld [vmem:[%s3981_s3 + $0x4] ss:$0 sm:$0xff]  ;;  %v1092_v47 = vld [vmem:[#allocation3 + $0x2c8] sm:$0xff] }
 0xbff   :  { %v807_v22 = vrot.slane %v806_v21, 1  ;;  %v823_v23 = vrot.slane %v822_v55, 2  ;;  %v837_v35 = vmul.f32 %v833_v32, %v3514_v50  ;;  %v55_v56 = vadd.f32 %v2131_v49, %v50_v46  ;;  %v1088_v32 = vld [vmem:[#allocation3 + $0x2a8] sm:$0xff]  ;;  %v1094_v43 = vld [vmem:[#allocation3 + $0x2d8] sm:$0xff] }
 0xc00   :  { %v845_v37 = vrot.slane %v836_v33, 4 }
 0xc01   :  { %v808_v29 = vadd.f32 %v807_v22, %v806_v21  ;;  %v824_v30 = vadd.f32 %v823_v23, %v822_v55  ;;  %v851_v39 = vrot.slane %v837_v35, 4  ;;  %v72_v3 = vadd.f32 %v71_v57, %v55_v56  ;;  %v983_v22 = vld [vmem:[#allocation3 + $0x218] sm:$0xff]  ;;  %v984_v23 = vld [vmem:[#allocation3 + $0x220] sm:$0xff] }
 0xc02   :  { %v846_v44 = vadd.f32 %v845_v37, %v836_v33  ;;  %v3077_v24 = vpack.c.bf16 %v984_v23, %v983_v22  ;;  %v1089_v33 = vld [vmem:[#allocation3 + $0x2b0] sm:$0xff]  ;;  %v1099_v56 = vld [vmem:[#allocation3 + $0x300] sm:$0xff] }
 0xc03   :  { %v825_v31 = vrot.slane %v824_v30, 1  ;;  %3385 = vrcp.f32 %v808_v29  ;;  %v852_v48 = vadd.f32 %v851_v39, %v837_v35  ;;  %v89_v10 = vadd.f32 %v88_v4, %v72_v3  ;;  %v1182_v3 = vld [vmem:[#allocation3 + $0x338] sm:$0xff] }
 0xc04   :  { %v847_v53 = vrot.slane %v846_v44, 2  ;;  %3078 = vmatpush3.bf16.msra.mxu0 %v3077_v24  ;;  %v3685_v35 = vpack.c.bf16 %v1089_v33, %v1088_v32  ;;  %v3763_v33 = vld [vmem:[%s3981_s3 + $0x7] ss:$0 sm:$0xff] }
 0xc05   :  { %v826_v34 = vadd.f32 %v825_v31, %v824_v30  ;;  %v853_v60 = vrot.slane %v852_v48, 2  ;;  %3103 = vmatprep.subr.bf16.mxu0 %v3457_v18 }
 0xc06   :  { %v848_v0 = vadd.f32 %v847_v53, %v846_v44  ;;  %v1096_v53 = vld [vmem:[#allocation3 + $0x2e8] sm:$0xff] }
 0xc07   :  { %3387 = vrcp.f32 %v826_v34  ;;  %v854_v5 = vadd.f32 %v853_v60, %v852_v48  ;;  %v1090_v34 = vld [vmem:[#allocation3 + $0x2b8] sm:$0xff]  ;;  %v1093_v48 = vld [vmem:[#allocation3 + $0x2d0] sm:$0xff] }
 0xc08   :  { %v3688_v37 = vpack.c.bf16 %v1091_v36, %v1090_v34  ;;  %v3707_v49 = vpack.c.bf16 %v1093_v48, %v1092_v47  ;;  %v1101_v60 = vld [vmem:[#allocation3 + $0x310] sm:$0xff]  ;;  %v3768_v36 = vld [vmem:[%s3981_s3 + $0x8] ss:$0 sm:$0xff] }
 0xc09   :  { %v855_v11 = vrot.slane %v854_v5, 1  ;;  %v3722_v61 = vpack.c.bf16 %v1101_v60, %v1100_v59 }
 0xc0b   :  { %v856_v17 = vadd.f32 %v855_v11, %v854_v5  ;;  %v1183_v5 = vld [vmem:[#allocation3 + $0x340] sm:$0xff] }
 0xc0d   :  { %v3386_v45 = vpop.eup %3385 }
 0xc0e   :  { %v831_v42 = vmul.f32 %v3386_v45, %v3378_v13 }
 0xc10   :  { %v835_v50 = vmul.f32 %v831_v42, %v3502_v26  ;;  %v849_v26 = vrot.slane %v848_v0, 1 }
 0xc11   :  { %v3388_v54 = vpop.eup %3387 }
 0xc12   :  { %v834_v27 = vmul.f32 %v3388_v54, %v3380_v16  ;;  %v839_v58 = vrot.slane %v835_v50, 4  ;;  %v850_v13 = vadd.f32 %v849_v26, %v848_v0  ;;  %v875_v16 = vrot.slane %v89_v10, 4  ;;  %v1097_v54 = vld [vmem:[#allocation3 + $0x2f0] sm:$0xff]  ;;  %v1184_v26 = vld [vmem:[#allocation3 + $0x348] sm:$0xff]  ;;  %v1187_v10 = vld [vmem:[#allocation3 + $0x360] sm:$0xff] }
 0xc14   :  { %v838_v62 = vmul.f32 %v834_v27, %v3522_v51  ;;  %v840_v63 = vadd.f32 %v839_v58, %v835_v50  ;;  %v3711_v50 = vpack.c.bf16 %v1095_v52, %v1094_v43  ;;  %v1098_v27 = vld [vmem:[#allocation3 + $0x2f8] sm:$0xff]  ;;  %v3715_v58 = vpack.c.bf16 %v1097_v54, %v1096_v53  ;;  %v3807_v54 = vld [vmem:[%s3981_s3 + $0xc] ss:$0 sm:$0xff] }
 0xc15   :  { %v3718_v57 = vpack.c.bf16 %v1099_v56, %v1098_v27 }
 0xc16   :  { %v841_v1 = vrot.slane %v840_v63, 2  ;;  %v857_v2 = vrot.slane %v838_v62, 4 }
 0xc18   :  { %v842_v6 = vadd.f32 %v841_v1, %v840_v63  ;;  %v858_v7 = vadd.f32 %v857_v2, %v838_v62  ;;  %v1102_v62 = vld [vmem:[#allocation3 + $0x318] sm:$0xff]  ;;  %v1103_v63 = vld [vmem:[#allocation3 + $0x320] sm:$0xff]  ;;  %v1180_v1 = vld [vmem:[#allocation3 + $0x328] sm:$0xff] }
 0xc19   :  { %v3726_v0 = vpack.c.bf16 %v1103_v63, %v1102_v62  ;;  %v1181_v2 = vld [vmem:[#allocation3 + $0x330] sm:$0xff]  ;;  %v1303_v62 = vld [vmem:[#allocation3 + $0x248] sm:$0xff] }
 0xc1a   :  { %v843_v8 = vrot.slane %v842_v6, 1  ;;  %v859_v9 = vrot.slane %v858_v7, 2  ;;  %v3731_v4 = vpack.c.bf16 %v1181_v2, %v1180_v1  ;;  %v1304_v63 = vld [vmem:[#allocation3 + $0x250] sm:$0xff]  ;;  %v1305_v1 = vld [vmem:[#allocation3 + $0x258] sm:$0xff]  ;;  %v1306_v2 = vld [vmem:[#allocation3 + $0x260] sm:$0xff] }
 0xc1c   :  { %v844_v12 = vadd.f32 %v843_v8, %v842_v6  ;;  %v860_v14 = vadd.f32 %v859_v9, %v858_v7  ;;  %v3734_v6 = vpack.c.bf16 %v1183_v5, %v1182_v3  ;;  %v1185_v7 = vld [vmem:[#allocation3 + $0x350] sm:$0xff]  ;;  %v1186_v9 = vld [vmem:[#allocation3 + $0x358] sm:$0xff]  ;;  %v3137_v3 = vpack.c.bf16 %v1306_v2, %v1305_v1  ;;  %v1307_v5 = vld [vmem:[#allocation3 + $0x268] sm:$0xff] }
 0xc1d   :  { %v3738_v8 = vpack.c.bf16 %v1185_v7, %v1184_v26  ;;  %v3742_v11 = vpack.c.bf16 %v1187_v10, %v1186_v9  ;;  %v1308_v26 = vld [vmem:[#allocation3 + $0x270] sm:$0xff]  ;;  %v1309_v7 = vld [vmem:[#allocation3 + $0x278] sm:$0xff]  ;;  %v1310_v10 = vld [vmem:[#allocation3 + $0x280] sm:$0xff] }
 0xc1e   :  { %v861_v15 = vrot.slane %v860_v14, 1  ;;  %v868_v51 = vsel %vm867_vm5, %v850_v13, %v844_v12  ;;  %v1188_v12 = vld [vmem:[#allocation3 + $0x368] sm:$0xff]  ;;  %v1189_v13 = vld [vmem:[#allocation3 + $0x370] sm:$0xff]  ;;  %v3140_v9 = vpack.c.bf16 %v1308_v26, %v1307_v5 }
 0xc1f   :  { %v870_v20 = vsel %vm869_vm6, %v856_v17, %v868_v51  ;;  %v1191_v51 = vld [vmem:[#allocation3 + $0x380] sm:$0xff]  ;;  %v1192_v17 = vld [vmem:[#allocation3 + $0x388] sm:$0xff]  ;;  %v1583_v1 = vld [vmem:[#allocation3 + $0x3b0] sm:$0xff] }
 0xc20   :  { %v862_v19 = vadd.f32 %v861_v15, %v860_v14  ;;  %v3746_v14 = vpack.c.bf16 %v1189_v13, %v1188_v12  ;;  %v1190_v15 = vld [vmem:[#allocation3 + $0x378] sm:$0xff]  ;;  %v3143_v12 = vpack.c.bf16 %v1310_v10, %v1309_v7  ;;  %v1311_v13 = vld [vmem:[#allocation3 + $0x288] sm:$0xff]  ;;  %v1585_v10 = vld [vmem:[#allocation3 + $0x3c0] sm:$0xff] }
 0xc22   :  { %v872_v21 = vsel %vm871_vm7, %v862_v19, %v870_v20  ;;  %v1193_v19 = vld [vmem:[#allocation3 + $0x390] sm:$0xff] }
 0xc23   :  { %v877_v55 = vsel %vm37_vm4, %v872_v21, %v875_v16  ;;  %v3750_v16 = vpack.c.bf16 %v1191_v51, %v1190_v15  ;;  %v3754_v20 = vpack.c.bf16 %v1193_v19, %v1192_v17  ;;  %v1312_v15 = vld [vmem:[#allocation3 + $0x290] sm:$0xff]  ;;  %v1313_v17 = vld [vmem:[#allocation3 + $0x298] sm:$0xff]  ;;  %v1314_v19 = vld [vmem:[#allocation3 + $0x2a0] sm:$0xff] }
 0xc24   :  { %2562 = vmatmul.mubr.f32.vlgmr.msra.gmra.mrb[6].mxu1 %v877_v55  ;;  %v3146_v51 = vpack.c.bf16 %v1312_v15, %v1311_v13  ;;  %v1587_v13 = vld [vmem:[#allocation3 + $0x3d0] sm:$0xff] }
 0xc25   :  { %2631 = vmatprep.mubr.msk.f32.mxu1 %vm3458_vm0, %v3459_v25  ;;  %3081 = vmatpush3.bf16.msra.mxu1 %v3685_v35 }
 0xc26   :  { %3082 = vmatprep.subr.bf16.mxu1 %v3457_v18 }
 0xc29   :  { %3084 = vmatpush3.bf16.msra.mxu1 %v3688_v37 }
 0xc2a   :  { %3085 = vmatprep.subr.bf16.mxu1 %v3457_v18 }
 0xc2d   :  { %3087 = vmatpush3.bf16.msra.mxu1 %v3707_v49 }
 0xc2e   :  { %3088 = vmatprep.subr.bf16.mxu1 %v3457_v18 }
 0xc31   :  { %3090 = vmatpush3.bf16.msra.mxu1 %v3711_v50 }
 0xc32   :  { %3091 = vmatprep.subr.bf16.mxu1 %v3457_v18 }
 0xc35   :  { %3093 = vmatpush3.bf16.msra.mxu1 %v3715_v58 }
 0xc36   :  { %3094 = vmatprep.subr.bf16.mxu1 %v3457_v18 }
 0xc39   :  { %3096 = vmatpush3.bf16.msra.mxu1 %v3718_v57 }
 0xc3a   :  { %3097 = vmatprep.subr.bf16.mxu1 %v3457_v18 }
 0xc3d   :  { %3099 = vmatpush3.bf16.msra.mxu1 %v3722_v61 }
 0xc3e   :  { %3100 = vmatprep.subr.bf16.mxu1 %v3457_v18 }
 0xc41   :  { %3102 = vmatpush3.bf16.msra.mxu1 %v3726_v0 }
 0xc42   :  { %3127 = vmatprep.subr.bf16.mxu1 %v3457_v18 }
 0xcf7   :  { %v965_v29 = vpop.f32.mrb[6].mxu1 }
 0xcf8   :  { %v3680_v30 = vadd.f32 %v2144_v28, %v965_v29  ;;  %v2563_v31 = vpop.f32.mrb[7].mxu1 }
 0xcfa   :  { %2597 = vmatmul.mubr.f32.vlgmr.msra.gmra.mrb[8].mxu0 %v3680_v30 }
 0xcfb   :  { %2666 = vmatprep.mubr.msk.f32.mxu0 %vm3458_vm0, %v3459_v25  ;;  %3105 = vmatpush3.bf16.msra.mxu0 %v3731_v4 }
 0xcfc   :  { %3106 = vmatprep.subr.bf16.mxu0 %v3457_v18 }
 0xcff   :  { %3108 = vmatpush3.bf16.msra.mxu0 %v3734_v6 }
 0xd00   :  { %3109 = vmatprep.subr.bf16.mxu0 %v3457_v18 }
 0xd03   :  { %3111 = vmatpush3.bf16.msra.mxu0 %v3738_v8 }
 0xd04   :  { %3112 = vmatprep.subr.bf16.mxu0 %v3457_v18 }
 0xd07   :  { %3114 = vmatpush3.bf16.msra.mxu0 %v3742_v11 }
 0xd08   :  { %3115 = vmatprep.subr.bf16.mxu0 %v3457_v18 }
 0xd0b   :  { %3117 = vmatpush3.bf16.msra.mxu0 %v3746_v14 }
 0xd0c   :  { %3118 = vmatprep.subr.bf16.mxu0 %v3457_v18 }
 0xd0f   :  { %3120 = vmatpush3.bf16.msra.mxu0 %v3750_v16 }
 0xd10   :  { %3121 = vmatprep.subr.bf16.mxu0 %v3457_v18 }
 0xd13   :  { %3123 = vmatpush3.bf16.msra.mxu0 %v3754_v20 }
 0xd14   :  { %3124 = vmatprep.subr.bf16.mxu0 %v3457_v18 }
 0xdcd   :  { %v1056_v39 = vpop.f32.mrb[8].mxu0 }
 0xdce   :  { %v3696_v40 = vadd.f32 %v2145_v38, %v1056_v39  ;;  %v2598_v41 = vpop.f32.mrb[9].mxu0 }
 0xdcf   :  { %v1194_v41 = vld [vmem:[#allocation3 + $0x398] sm:$0xff] }
 0xdd0   :  { %v3700_v44 = vadd.f32 %v3696_v40, %v3680_v30 }
 0xdd2   :  { %v1063_v45 = vsel %vm37_vm4, %v3700_v44, 0.0  ;;  %v1067_v42 = vmul.f32 %v3700_v44, %v3700_v44 }
 0xdd3   :  { %1064 = vadd.xlane.f32.xlu0 %v1063_v45 }
 0xdd4   :  { %v1068_v46 = vsel %vm37_vm4, %v1067_v42, 0.0  ;;  %v3781_v42 = vld [vmem:[%s3981_s3 + $0xb] ss:$0 sm:$0xff] }
 0xdd5   :  { %1069 = vadd.xlane.f32.xlu1 %v1068_v46 }
 0xe60   :  { %v1065_v21 = vpop.xlane.xlu0 %1064 }
 0xe61   :  { %v1066_v55 = vmul.f32 0.03125, %v1065_v21  ;;  %v3149_v21 = vpack.c.bf16 %v1314_v19, %v1313_v17  ;;  %v1589_v17 = vld [vmem:[#allocation3 + $0x3e0] sm:$0xff] }
 0xe62   :  { %v1070_v22 = vpop.xlane.xlu1 %1069 }
 0xe63   :  { %v1072_v23 = vmul.f32 %v1066_v55, %v1066_v55  ;;  %v1071_v24 = vmul.f32 0.03125, %v1070_v22  ;;  %v1074_v31 = vsub.f32 %v3700_v44, %v1066_v55  ;;  %v1195_v44 = vld [vmem:[#allocation3 + $0x3a0] sm:$0xff] }
 0xe64   :  { %v3774_v45 = vpack.c.bf16 %v1195_v44, %v1194_v41  ;;  %v3826_v41 = vld [vmem:[%s3981_s3 + $0xa] ss:$0 sm:$0xff] }
 0xe65   :  { %v1073_v28 = vsub.f32 %v1071_v24, %v1072_v23 }
 0xe66   :  { %3126 = vmatpush3.bf16.msra.mxu0 %v3774_v45 }
 0xe67   :  { %v1075_v29 = vadd.f32 1e-05, %v1073_v28  ;;  %3151 = vmatprep.subr.bf16.mxu0 %v3457_v18 }
 0xe69   :  { %3389 = vrsqrt.f32 %v1075_v29 }
 0xe73   :  { %v3390_v32 = vpop.eup %3389 }
 0xe74   :  { %v1077_v34 = vmul.f32 %v3390_v32, %v1074_v31 }
 0xe76   :  { %v1082_v38 = vmul.f32 %v3763_v33, %v1077_v34 }
 0xe78   :  { %v1087_v39 = vadd.f32 %v3768_v36, %v1082_v38  ;;  %v3821_v38 = vld [vmem:[%s3981_s3 + $0x9] ss:$0 sm:$0xff] }
 0xe7a   :  { %2632 = vmatmul.mubr.f32.vlgmr.msra.gmra.mrb[8].mxu1 %v1087_v39 }
 0xe7b   :  { %2701 = vmatprep.mubr.msk.f32.mxu1 %vm3458_vm0, %v3459_v25 }
 0xf4d   :  { %v1175_v46 = vpop.f32.mrb[8].mxu1 }
 0xf4e   :  { %v1176_v47 = vadd.f32 %v3781_v42, %v1175_v46  ;;  %v2633_v48 = vpop.f32.mrb[9].mxu1 }
 0xf50   :  { %v1179_v43 = vmax.f32 %v1176_v47, 0.0 }
 0xf52   :  { %2667 = vmatmul.mubr.f32.vlgmr.msra.gmra.mrb[10].mxu0 %v1179_v43 }
 0xf53   :  { %3153 = vmatpush3.bf16.msra.mxu0 %v3685_v35  ;;  %2736 = vmatprep.mubr.msk.f32.mxu0 %vm3458_vm0, %v3459_v25  ;;  %v1299_v35 = vld [vmem:[#allocation3 + $0x228] sm:$0xff] }
 0xf54   :  { %3154 = vmatprep.subr.bf16.mxu0 %v3457_v18 }
 0xf57   :  { %3156 = vmatpush3.bf16.msra.mxu0 %v3688_v37  ;;  %v1300_v37 = vld [vmem:[#allocation3 + $0x230] sm:$0xff] }
 0xf58   :  { %3157 = vmatprep.subr.bf16.mxu0 %v3457_v18  ;;  %v3128_v52 = vpack.c.bf16 %v1300_v37, %v1299_v35 }
 0xf5a   :  { %3129 = vmatpush3.bf16.msra.mxu1 %v3128_v52 }
 0xf5b   :  { %3159 = vmatpush3.bf16.msra.mxu0 %v3707_v49  ;;  %v1301_v49 = vld [vmem:[#allocation3 + $0x238] sm:$0xff]  ;;  %3130 = vmatprep.subr.bf16.mxu1 %v3457_v18 }
 0xf5c   :  { %3160 = vmatprep.subr.bf16.mxu0 %v3457_v18 }
 0xf5f   :  { %3162 = vmatpush3.bf16.msra.mxu0 %v3711_v50  ;;  %v1302_v50 = vld [vmem:[#allocation3 + $0x240] sm:$0xff] }
 0xf60   :  { %3163 = vmatprep.subr.bf16.mxu0 %v3457_v18  ;;  %v3131_v53 = vpack.c.bf16 %v1302_v50, %v1301_v49 }
 0xf62   :  { %3132 = vmatpush3.bf16.msra.mxu1 %v3131_v53 }
 0xf63   :  { %3165 = vmatpush3.bf16.msra.mxu0 %v3715_v58  ;;  %3133 = vmatprep.subr.bf16.mxu1 %v3457_v18 }
 0xf64   :  { %3166 = vmatprep.subr.bf16.mxu0 %v3457_v18 }
 0xf67   :  { %3168 = vmatpush3.bf16.msra.mxu0 %v3718_v57 }
 0xf68   :  { %3169 = vmatprep.subr.bf16.mxu0 %v3457_v18 }
 0xf6b   :  { %3171 = vmatpush3.bf16.msra.mxu0 %v3722_v61 }
 0xf6c   :  { %3172 = vmatprep.subr.bf16.mxu0 %v3457_v18 }
 0xf6f   :  { %3174 = vmatpush3.bf16.msra.mxu0 %v3726_v0  ;;  %v3134_v0 = vpack.c.bf16 %v1304_v63, %v1303_v62 }
 0xf70   :  { %3199 = vmatprep.subr.bf16.mxu0 %v3457_v18 }
 0xf71   :  { %3135 = vmatpush3.bf16.msra.mxu1 %v3134_v0  ;;  %v1582_v0 = vld [vmem:[#allocation3 + $0x3a8] sm:$0xff] }
 0xf72   :  { %3136 = vmatprep.subr.bf16.mxu1 %v3457_v18  ;;  %v3200_v2 = vpack.c.bf16 %v1583_v1, %v1582_v0 }
 0xf75   :  { %3138 = vmatpush3.bf16.msra.mxu1 %v3137_v3 }
 0xf76   :  { %3139 = vmatprep.subr.bf16.mxu1 %v3457_v18 }
 0xf79   :  { %3141 = vmatpush3.bf16.msra.mxu1 %v3140_v9  ;;  %v1584_v9 = vld [vmem:[#allocation3 + $0x3b8] sm:$0xff] }
 0xf7a   :  { %3142 = vmatprep.subr.bf16.mxu1 %v3457_v18 }
 0xf7d   :  { %3144 = vmatpush3.bf16.msra.mxu1 %v3143_v12  ;;  %v3203_v12 = vpack.c.bf16 %v1585_v10, %v1584_v9 }
 0xf7e   :  { %3145 = vmatprep.subr.bf16.mxu1 %v3457_v18 }
 0xf81   :  { %3147 = vmatpush3.bf16.msra.mxu1 %v3146_v51  ;;  %v1588_v51 = vld [vmem:[#allocation3 + $0x3d8] sm:$0xff] }
 0xf82   :  { %3148 = vmatprep.subr.bf16.mxu1 %v3457_v18  ;;  %v3209_v19 = vpack.c.bf16 %v1589_v17, %v1588_v51 }
 0xf85   :  { %3150 = vmatpush3.bf16.msra.mxu1 %v3149_v21  ;;  %v1590_v21 = vld [vmem:[#allocation3 + $0x3e8] sm:$0xff] }
 0xf86   :  { %3175 = vmatprep.subr.bf16.mxu1 %v3457_v18 }
0x1025   :  { %v1267_v27 = vpop.f32.mrb[10].mxu0 }
0x1026   :  { %v1268_v58 = vadd.f32 %v3807_v54, %v1267_v27  ;;  %v2668_v56 = vpop.f32.mrb[11].mxu0 }
0x1028   :  { %v1271_v57 = vadd.f32 %v1268_v58, %v1087_v39 }
0x102a   :  { %v1274_v59 = vsel %vm37_vm4, %v1271_v57, 0.0  ;;  %v1278_v60 = vmul.f32 %v1271_v57, %v1271_v57 }
0x102b   :  { %1275 = vadd.xlane.f32.xlu0 %v1274_v59 }
0x102c   :  { %v1279_v61 = vsel %vm37_vm4, %v1278_v60, 0.0 }
0x102d   :  { %1280 = vadd.xlane.f32.xlu1 %v1279_v61 }
0x10b8   :  { %v1276_v55 = vpop.xlane.xlu0 %1275 }
0x10b9   :  { %v1277_v22 = vmul.f32 0.03125, %v1276_v55  ;;  %v1591_v55 = vld [vmem:[#allocation3 + $0x3f0] sm:$0xff] }
0x10ba   :  { %v1281_v23 = vpop.xlane.xlu1 %1280 }
0x10bb   :  { %v1283_v24 = vmul.f32 %v1277_v22, %v1277_v22  ;;  %v1282_v28 = vmul.f32 0.03125, %v1281_v23  ;;  %v1285_v32 = vsub.f32 %v1271_v57, %v1277_v22  ;;  %v3212_v22 = vpack.c.bf16 %v1591_v55, %v1590_v21  ;;  %v1592_v23 = vld [vmem:[#allocation3 + $0x3f8] sm:$0xff]  ;;  %v1813_v21 = vld [vmem:[#allocation3 + $0x4a8] sm:$0xff]  ;;  %v1814_v55 = vld [vmem:[#allocation3 + $0x4b0] sm:$0xff] }
0x10bd   :  { %v1284_v29 = vsub.f32 %v1282_v28, %v1283_v24  ;;  %v1593_v24 = vld [vmem:[#allocation3 + $0x400] sm:$0xff] }
0x10be   :  { %v3215_v28 = vpack.c.bf16 %v1593_v24, %v1592_v23 }
0x10bf   :  { %v1286_v31 = vadd.f32 1e-05, %v1284_v29  ;;  %v1594_v29 = vld [vmem:[#allocation3 + $0x408] sm:$0xff] }
0x10c1   :  { %3391 = vrsqrt.f32 %v1286_v31  ;;  %v1595_v31 = vld [vmem:[#allocation3 + $0x410] sm:$0xff] }
0x10cb   :  { %v3392_v34 = vpop.eup %3391 }
0x10cc   :  { %v1288_v39 = vmul.f32 %v3392_v34, %v1285_v32  ;;  %v3218_v32 = vpack.c.bf16 %v1595_v31, %v1594_v29  ;;  %v1596_v34 = vld [vmem:[#allocation3 + $0x418] sm:$0xff] }
0x10ce   :  { %v1293_v44 = vmul.f32 %v3821_v38, %v1288_v39  ;;  %v1597_v39 = vld [vmem:[#allocation3 + $0x420] sm:$0xff] }
0x10d0   :  { %v3830_v46 = vadd.f32 %v3826_v41, %v1293_v44  ;;  %v3221_v44 = vpack.c.bf16 %v1597_v39, %v1596_v34 }
0x10d2   :  { %2702 = vmatmul.mubr.f32.vlgmr.msra.gmra.mrb[10].mxu1 %v3830_v46 }
0x10d3   :  { %3177 = vmatpush3.bf16.msra.mxu1 %v3731_v4  ;;  %2771 = vmatprep.mubr.msk.f32.mxu1 %vm3458_vm0, %v3459_v25  ;;  %v2152_v4 = vld [vmem:[%s3981_s3 + $0x6] ss:$0 sm:$0xff] }
0x10d4   :  { %3178 = vmatprep.subr.bf16.mxu1 %v3457_v18 }
0x10d7   :  { %3180 = vmatpush3.bf16.msra.mxu1 %v3734_v6 }
0x10d8   :  { %3181 = vmatprep.subr.bf16.mxu1 %v3457_v18 }
0x10db   :  { %3183 = vmatpush3.bf16.msra.mxu1 %v3738_v8 }
0x10dc   :  { %3184 = vmatprep.subr.bf16.mxu1 %v3457_v18 }
0x10df   :  { %3186 = vmatpush3.bf16.msra.mxu1 %v3742_v11  ;;  %v1391_v11 = vrot.slane %v3680_v30, 4 }
0x10e0   :  { %3187 = vmatprep.subr.bf16.mxu1 %v3457_v18 }
0x10e3   :  { %3189 = vmatpush3.bf16.msra.mxu1 %v3746_v14 }
0x10e4   :  { %3190 = vmatprep.subr.bf16.mxu1 %v3457_v18 }
0x10e7   :  { %3192 = vmatpush3.bf16.msra.mxu1 %v3750_v16 }
0x10e8   :  { %3193 = vmatprep.subr.bf16.mxu1 %v3457_v18 }
0x10eb   :  { %3195 = vmatpush3.bf16.msra.mxu1 %v3754_v20 }
0x10ec   :  { %3196 = vmatprep.subr.bf16.mxu1 %v3457_v18 }
0x10ef   :  { %3198 = vmatpush3.bf16.msra.mxu1 %v3774_v45 }
0x10f0   :  { %3223 = vmatprep.subr.bf16.mxu1 %v3457_v18 }
0x11a5   :  { %v1386_v6 = vpop.f32.mrb[10].mxu1 }
0x11a6   :  { %v1387_v8 = vadd.f32 %v2152_v4, %v1386_v6  ;;  %v2703_v14 = vpop.f32.mrb[11].mxu1  ;;  %v1673_v4 = vld [vmem:[#allocation3 + $0x428] sm:$0xff]  ;;  %v1674_v6 = vld [vmem:[#allocation3 + $0x430] sm:$0xff] }
0x11a7   :  { %v1676_v14 = vld [vmem:[#allocation3 + $0x440] sm:$0xff] }
0x11a8   :  { %v1393_v16 = vadd.f32 %v1391_v11, %v1387_v8  ;;  %v1675_v8 = vld [vmem:[#allocation3 + $0x438] sm:$0xff]  ;;  %v3224_v11 = vpack.c.bf16 %v1674_v6, %v1673_v4  ;;  %v3910_v4 = vld [vmem:[%s3981_s3 + $0xf] ss:$0 sm:$0xff] }
0x11aa   :  { %v1395_v47 = vrot.slane %v1393_v16, 4  ;;  %v3227_v16 = vpack.c.bf16 %v1676_v14, %v1675_v8  ;;  %v3915_v8 = vld [vmem:[%s3981_s3 + $0x10] ss:$0 sm:$0xff] }
0x11ac   :  { %v1397_v20 = vadd.f32 %v1395_v47, %v3696_v40  ;;  %v1677_v47 = vld [vmem:[#allocation3 + $0x448] sm:$0xff] }
0x11ae   :  { %v1399_v48 = vsel %vm1398_vm8, %v1397_v20, 0.0  ;;  %v1403_v43 = vmul.f32 %v1397_v20, %v1397_v20 }
0x11af   :  { %1400 = vadd.xlane.f32.xlu0 %v1399_v48 }
0x11b0   :  { %v1404_v45 = vsel %vm1398_vm8, %v1403_v43, 0.0  ;;  %v1679_v43 = vld [vmem:[#allocation3 + $0x458] sm:$0xff] }
0x11b1   :  { %1405 = vadd.xlane.f32.xlu1 %v1404_v45  ;;  %v1680_v45 = vld [vmem:[#allocation3 + $0x460] sm:$0xff] }
0x123c   :  { %v1401_v35 = vpop.xlane.xlu0 %1400 }
0x123d   :  { %v1402_v37 = vmul.f32 0.03125, %v1401_v35  ;;  %v3233_v35 = vpack.c.bf16 %v1680_v45, %v1679_v43  ;;  %v1815_v45 = vld [vmem:[#allocation3 + $0x4b8] sm:$0xff] }
0x123e   :  { %v1406_v49 = vpop.xlane.xlu1 %1405 }
0x123f   :  { %v1408_v52 = vmul.f32 %v1402_v37, %v1402_v37  ;;  %v1407_v50 = vmul.f32 0.03125, %v1406_v49  ;;  %v1410_v27 = vsub.f32 %v1397_v20, %v1402_v37  ;;  %v1678_v20 = vld [vmem:[#allocation3 + $0x450] sm:$0xff]  ;;  %v1681_v37 = vld [vmem:[#allocation3 + $0x468] sm:$0xff] }
0x1240   :  { %v3230_v48 = vpack.c.bf16 %v1678_v20, %v1677_v47  ;;  %v1682_v49 = vld [vmem:[#allocation3 + $0x470] sm:$0xff] }
0x1241   :  { %v1409_v53 = vsub.f32 %v1407_v50, %v1408_v52  ;;  %v3236_v52 = vpack.c.bf16 %v1682_v49, %v1681_v37  ;;  %v1683_v50 = vld [vmem:[#allocation3 + $0x478] sm:$0xff]  ;;  %v1817_v49 = vld [vmem:[#allocation3 + $0x4c8] sm:$0xff] }
0x1243   :  { %v1411_v30 = vadd.f32 1e-05, %v1409_v53  ;;  %v1684_v53 = vld [vmem:[#allocation3 + $0x480] sm:$0xff] }
0x1245   :  { %3393 = vrsqrt.f32 %v1411_v30  ;;  %v3239_v30 = vpack.c.bf16 %v1684_v53, %v1683_v50  ;;  %v1819_v53 = vld [vmem:[#allocation3 + $0x4d8] sm:$0xff] }
0x124f   :  { %v3394_v58 = vpop.eup %3393 }
0x1250   :  { %v1413_v56 = vmul.f32 %v3394_v58, %v1410_v27  ;;  %v1685_v27 = vld [vmem:[#allocation3 + $0x488] sm:$0xff]  ;;  %v1686_v58 = vld [vmem:[#allocation3 + $0x490] sm:$0xff] }
0x1252   :  { %v1414_v40 = vmul.f32 %v3763_v33, %v1413_v56  ;;  %v3242_v56 = vpack.c.bf16 %v1686_v58, %v1685_v27  ;;  %v1821_v58 = vld [vmem:[#allocation3 + $0x4e8] sm:$0xff] }
0x1254   :  { %v1415_v57 = vadd.f32 %v3768_v36, %v1414_v40 }
0x1256   :  { %v1417_v59 = vrot.slane %v1415_v57, 4 }
0x1258   :  { %2737 = vmatmul.mubr.f32.vlgmr.msra.gmra.mrb[12].mxu0 %v1417_v59 }
0x1259   :  { %2806 = vmatprep.mubr.msk.f32.mxu0 %vm3458_vm0, %v3459_v25  ;;  %3201 = vmatpush3.bf16.msra.mxu0 %v3200_v2 }
0x125a   :  { %3202 = vmatprep.subr.bf16.mxu0 %v3457_v18 }
0x125d   :  { %3204 = vmatpush3.bf16.msra.mxu0 %v3203_v12 }
0x125e   :  { %3205 = vmatprep.subr.bf16.mxu0 %v3457_v18 }
0x132b   :  { %v1485_v60 = vpop.f32.mrb[12].mxu0 }
0x132c   :  { %v1486_v61 = vadd.f32 %v3781_v42, %v1485_v60  ;;  %v2738_v62 = vpop.f32.mrb[13].mxu0 }
0x132e   :  { %v1489_v63 = vmax.f32 %v1486_v61, 0.0 }
0x1330   :  { %2772 = vmatmul.mubr.f32.vlgmr.msra.gmra.mrb[12].mxu1 %v1489_v63 }
0x1331   :  { %2841 = vmatprep.mubr.msk.f32.mxu1 %vm3458_vm0, %v3459_v25  ;;  %3225 = vmatpush3.bf16.msra.mxu1 %v3224_v11 }
0x1332   :  { %3226 = vmatprep.subr.bf16.mxu1 %v3457_v18 }
0x1335   :  { %3228 = vmatpush3.bf16.msra.mxu1 %v3227_v16 }
0x1336   :  { %3229 = vmatprep.subr.bf16.mxu1 %v3457_v18 }
0x1339   :  { %3231 = vmatpush3.bf16.msra.mxu1 %v3230_v48 }
0x133a   :  { %3232 = vmatprep.subr.bf16.mxu1 %v3457_v18 }
0x133d   :  { %3234 = vmatpush3.bf16.msra.mxu1 %v3233_v35  ;;  %v1816_v35 = vld [vmem:[#allocation3 + $0x4c0] sm:$0xff] }
0x133e   :  { %3235 = vmatprep.subr.bf16.mxu1 %v3457_v18  ;;  %v3251_v37 = vpack.c.bf16 %v1816_v35, %v1815_v45 }
0x1341   :  { %3237 = vmatpush3.bf16.msra.mxu1 %v3236_v52  ;;  %v1818_v52 = vld [vmem:[#allocation3 + $0x4d0] sm:$0xff] }
0x1342   :  { %3238 = vmatprep.subr.bf16.mxu1 %v3457_v18  ;;  %v3254_v50 = vpack.c.bf16 %v1818_v52, %v1817_v49  ;;  %v2029_v49 = vld [vmem:[#allocation3 + $0x5b8] sm:$0xff] }
0x1345   :  { %3240 = vmatpush3.bf16.msra.mxu1 %v3239_v30  ;;  %v1820_v30 = vld [vmem:[#allocation3 + $0x4e0] sm:$0xff] }
0x1346   :  { %3241 = vmatprep.subr.bf16.mxu1 %v3457_v18  ;;  %v3257_v27 = vpack.c.bf16 %v1820_v30, %v1819_v53  ;;  %v2158_v53 = vld [vmem:[%s3981_s3 + $0x14] ss:$0 sm:$0xff] }
0x1349   :  { %3243 = vmatpush3.bf16.msra.mxu1 %v3242_v56  ;;  %v1822_v56 = vld [vmem:[#allocation3 + $0x4f0] sm:$0xff] }
0x134a   :  { %3244 = vmatprep.subr.bf16.mxu1 %v3457_v18 }
0x1403   :  { %v1556_v33 = vpop.f32.mrb[12].mxu1 }
0x1404   :  { %v1557_v36 = vadd.f32 %v3807_v54, %v1556_v33  ;;  %v2773_v3 = vpop.f32.mrb[13].mxu1  ;;  %v1586_v54 = vld [vmem:[#allocation3 + $0x3c8] sm:$0xff] }
0x1405   :  { %v3206_v15 = vpack.c.bf16 %v1587_v13, %v1586_v54 }
0x1406   :  { %v3867_v5 = vadd.f32 %v1557_v36, %v1417_v59 }
0x1407   :  { %3207 = vmatpush3.bf16.msra.mxu0 %v3206_v15 }
0x1408   :  { %v1561_v42 = vsel %vm37_vm4, %v3867_v5, 0.0  ;;  %v1565_v26 = vmul.f32 %v3867_v5, %v3867_v5  ;;  %3208 = vmatprep.subr.bf16.mxu0 %v3457_v18 }
0x1409   :  { %1562 = vadd.xlane.f32.xlu0 %v1561_v42 }
0x140a   :  { %v1566_v7 = vsel %vm37_vm4, %v1565_v26, 0.0  ;;  %v1687_v26 = vld [vmem:[#allocation3 + $0x498] sm:$0xff] }
0x140b   :  { %1567 = vadd.xlane.f32.xlu1 %v1566_v7  ;;  %3210 = vmatpush3.bf16.msra.mxu0 %v3209_v19  ;;  %v1688_v7 = vld [vmem:[#allocation3 + $0x4a0] sm:$0xff] }
0x140c   :  { %3211 = vmatprep.subr.bf16.mxu0 %v3457_v18  ;;  %v3245_v9 = vpack.c.bf16 %v1688_v7, %v1687_v26  ;;  %v1911_v26 = vld [vmem:[#allocation3 + $0x540] sm:$0xff] }
0x140e   :  { %3246 = vmatpush3.bf16.msra.mxu1 %v3245_v9  ;;  %v1912_v9 = vld [vmem:[#allocation3 + $0x548] sm:$0xff] }
0x140f   :  { %3213 = vmatpush3.bf16.msra.mxu0 %v3212_v22  ;;  %3271 = vmatprep.subr.bf16.mxu1 %v3457_v18  ;;  %v3248_v22 = vpack.c.bf16 %v1814_v55, %v1813_v21  ;;  %v1921_v21 = vld [vmem:[#allocation3 + $0x590] sm:$0xff] }
0x1410   :  { %3214 = vmatprep.subr.bf16.mxu0 %v3457_v18 }
0x1413   :  { %3216 = vmatpush3.bf16.msra.mxu0 %v3215_v28 }
0x1414   :  { %3217 = vmatprep.subr.bf16.mxu0 %v3457_v18 }
0x1417   :  { %3219 = vmatpush3.bf16.msra.mxu0 %v3218_v32 }
0x1418   :  { %3220 = vmatprep.subr.bf16.mxu0 %v3457_v18 }
0x141b   :  { %3222 = vmatpush3.bf16.msra.mxu0 %v3221_v44 }
0x141c   :  { %3247 = vmatprep.subr.bf16.mxu0 %v3457_v18 }
0x1496   :  { %v1563_v40 = vpop.xlane.xlu0 %1562 }
0x1497   :  { %v1564_v57 = vmul.f32 0.03125, %v1563_v40  ;;  %v3260_v40 = vpack.c.bf16 %v1822_v56, %v1821_v58 }
0x1498   :  { %v1568_v59 = vpop.xlane.xlu1 %1567 }
0x1499   :  { %v1570_v60 = vmul.f32 %v1564_v57, %v1564_v57  ;;  %v1569_v61 = vmul.f32 0.03125, %v1568_v59  ;;  %v1572_v0 = vsub.f32 %v3867_v5, %v1564_v57  ;;  %v1823_v57 = vld [vmem:[#allocation3 + $0x4f8] sm:$0xff]  ;;  %v1824_v59 = vld [vmem:[#allocation3 + $0x500] sm:$0xff] }
0x149b   :  { %v1571_v62 = vsub.f32 %v1569_v61, %v1570_v60  ;;  %v3263_v60 = vpack.c.bf16 %v1824_v59, %v1823_v57  ;;  %v1825_v61 = vld [vmem:[#allocation3 + $0x508] sm:$0xff] }
0x149d   :  { %v1573_v63 = vadd.f32 1e-05, %v1571_v62  ;;  %v1826_v62 = vld [vmem:[#allocation3 + $0x510] sm:$0xff] }
0x149f   :  { %3395 = vrsqrt.f32 %v1573_v63  ;;  %v3266_v63 = vpack.c.bf16 %v1826_v62, %v1825_v61  ;;  %v2032_v61 = vld [vmem:[#allocation3 + $0x5d0] sm:$0xff] }
0x14a9   :  { %v3396_v1 = vpop.eup %3395 }
0x14aa   :  { %v1575_v2 = vmul.f32 %v3396_v1, %v1572_v0  ;;  %v1827_v0 = vld [vmem:[#allocation3 + $0x518] sm:$0xff]  ;;  %v1828_v1 = vld [vmem:[#allocation3 + $0x520] sm:$0xff] }
0x14ac   :  { %v1576_v33 = vmul.f32 %v3821_v38, %v1575_v2  ;;  %v2153_v38 = vld [vmem:[%s3981_s3 + $0xd] ss:$0 sm:$0xff]  ;;  %v3269_v2 = vpack.c.bf16 %v1828_v1, %v1827_v0  ;;  %v2034_v0 = vld [vmem:[#allocation3 + $0x5e0] sm:$0xff] }
0x14ae   :  { %v1577_v36 = vadd.f32 %v3826_v41, %v1576_v33  ;;  %v1908_v33 = vld [vmem:[#allocation3 + $0x528] sm:$0xff] }
0x14b0   :  { %v1579_v3 = vrot.slane %v1577_v36, 4  ;;  %v1909_v36 = vld [vmem:[#allocation3 + $0x530] sm:$0xff] }
0x14b2   :  { %v1581_v42 = vsel %vm37_vm4, %v3830_v46, %v1579_v3  ;;  %v2154_v46 = vld [vmem:[%s3981_s3 + $0xe] ss:$0 sm:$0xff]  ;;  %v1910_v3 = vld [vmem:[#allocation3 + $0x538] sm:$0xff] }
0x14b3   :  { %2807 = vmatmul.mubr.f32.vlgmr.msra.gmra.mrb[14].mxu0 %v1581_v42  ;;  %v3272_v42 = vpack.c.bf16 %v1909_v36, %v1908_v33  ;;  %v3275_v7 = vpack.c.bf16 %v1911_v26, %v1910_v3  ;;  %v2036_v33 = vld [vmem:[#allocation3 + $0x5f0] sm:$0xff]  ;;  %v2037_v36 = vld [vmem:[#allocation3 + $0x5f8] sm:$0xff] }
0x14b4   :  { %2876 = vmatprep.mubr.msk.f32.mxu0 %vm3458_vm0, %v3459_v25  ;;  %3249 = vmatpush3.bf16.msra.mxu0 %v3248_v22 }
0x14b5   :  { %3250 = vmatprep.subr.bf16.mxu0 %v3457_v18 }
0x14b8   :  { %3252 = vmatpush3.bf16.msra.mxu0 %v3251_v37 }
0x14b9   :  { %3253 = vmatprep.subr.bf16.mxu0 %v3457_v18 }
0x14bc   :  { %3255 = vmatpush3.bf16.msra.mxu0 %v3254_v50  ;;  %v2030_v50 = vld [vmem:[#allocation3 + $0x5c0] sm:$0xff] }
0x14bd   :  { %3256 = vmatprep.subr.bf16.mxu0 %v3457_v18 }
0x14c0   :  { %3258 = vmatpush3.bf16.msra.mxu0 %v3257_v27 }
0x14c1   :  { %3259 = vmatprep.subr.bf16.mxu0 %v3457_v18 }
0x14c4   :  { %3261 = vmatpush3.bf16.msra.mxu0 %v3260_v40 }
0x14c5   :  { %3262 = vmatprep.subr.bf16.mxu0 %v3457_v18 }
0x14c8   :  { %3264 = vmatpush3.bf16.msra.mxu0 %v3263_v60  ;;  %v2031_v60 = vld [vmem:[#allocation3 + $0x5c8] sm:$0xff] }
0x14c9   :  { %3265 = vmatprep.subr.bf16.mxu0 %v3457_v18  ;;  %v3302_v62 = vpack.c.bf16 %v2032_v61, %v2031_v60 }
0x14cc   :  { %3267 = vmatpush3.bf16.msra.mxu0 %v3266_v63  ;;  %v2033_v63 = vld [vmem:[#allocation3 + $0x5d8] sm:$0xff] }
0x14cd   :  { %3268 = vmatprep.subr.bf16.mxu0 %v3457_v18  ;;  %v3305_v1 = vpack.c.bf16 %v2034_v0, %v2033_v63 }
0x14d0   :  { %3270 = vmatpush3.bf16.msra.mxu0 %v3269_v2  ;;  %v2035_v2 = vld [vmem:[#allocation3 + $0x5e8] sm:$0xff] }
0x14d1   :  { %3295 = vmatprep.subr.bf16.mxu0 %v3457_v18  ;;  %v3308_v3 = vpack.c.bf16 %v2036_v33, %v2035_v2 }
0x1586   :  { %v1669_v5 = vpop.f32.mrb[14].mxu0 }
0x1587   :  { %v1670_v41 = vadd.f32 %v2153_v38, %v1669_v5  ;;  %v2808_v10 = vpop.f32.mrb[15].mxu0  ;;  %v1913_v38 = vld [vmem:[#allocation3 + $0x550] sm:$0xff] }
0x1588   :  { %v3278_v5 = vpack.c.bf16 %v1913_v38, %v1912_v9  ;;  %v1915_v10 = vld [vmem:[#allocation3 + $0x560] sm:$0xff]  ;;  %v2040_v9 = vld [vmem:[#allocation3 + $0x610] sm:$0xff] }
0x1589   :  { %2842 = vmatmul.mubr.f32.vlgmr.msra.gmra.mrb[14].mxu1 %v1670_v41 }
0x158a   :  { %2911 = vmatprep.mubr.msk.f32.mxu1 %vm3458_vm0, %v3459_v25  ;;  %3273 = vmatpush3.bf16.msra.mxu1 %v3272_v42  ;;  %v2038_v42 = vld [vmem:[#allocation3 + $0x600] sm:$0xff] }
0x158b   :  { %3274 = vmatprep.subr.bf16.mxu1 %v3457_v18  ;;  %v3311_v26 = vpack.c.bf16 %v2038_v42, %v2037_v36 }
0x158e   :  { %3276 = vmatpush3.bf16.msra.mxu1 %v3275_v7  ;;  %v2039_v7 = vld [vmem:[#allocation3 + $0x608] sm:$0xff] }
0x158f   :  { %3277 = vmatprep.subr.bf16.mxu1 %v3457_v18  ;;  %v3314_v38 = vpack.c.bf16 %v2040_v9, %v2039_v7 }
0x1592   :  { %3279 = vmatpush3.bf16.msra.mxu1 %v3278_v5  ;;  %v2041_v5 = vld [vmem:[#allocation3 + $0x618] sm:$0xff] }
0x1593   :  { %3280 = vmatprep.subr.bf16.mxu1 %v3457_v18 }
0x165c   :  { %v1760_v12 = vpop.f32.mrb[14].mxu1 }
0x165d   :  { %v1761_v54 = vadd.f32 %v2154_v46, %v1760_v12  ;;  %v2843_v13 = vpop.f32.mrb[15].mxu1  ;;  %v1916_v12 = vld [vmem:[#allocation3 + $0x568] sm:$0xff] }
0x165f   :  { %v1764_v15 = vadd.f32 %v1761_v54, %v1670_v41  ;;  %v1914_v41 = vld [vmem:[#allocation3 + $0x558] sm:$0xff] }
0x1660   :  { %v3281_v46 = vpack.c.bf16 %v1915_v10, %v1914_v41  ;;  %v2042_v41 = vld [vmem:[#allocation3 + $0x620] sm:$0xff] }
0x1661   :  { %v1767_v51 = vsel %vm37_vm4, %v1764_v15, 0.0  ;;  %v1771_v17 = vmul.f32 %v1764_v15, %v1764_v15  ;;  %v3317_v10 = vpack.c.bf16 %v2042_v41, %v2041_v5 }
0x1662   :  { %1768 = vadd.xlane.f32.xlu0 %v1767_v51  ;;  %3282 = vmatpush3.bf16.msra.mxu1 %v3281_v46  ;;  %v1919_v51 = vld [vmem:[#allocation3 + $0x580] sm:$0xff] }
0x1663   :  { %v1772_v19 = vsel %vm37_vm4, %v1771_v17, 0.0  ;;  %3283 = vmatprep.subr.bf16.mxu1 %v3457_v18 }
0x1664   :  { %1773 = vadd.xlane.f32.xlu1 %v1772_v19  ;;  %v1920_v19 = vld [vmem:[#allocation3 + $0x588] sm:$0xff] }
0x1665   :  { %v3290_v55 = vpack.c.bf16 %v1921_v21, %v1920_v19 }
0x16ef   :  { %v1769_v23 = vpop.xlane.xlu0 %1768 }
0x16f0   :  { %v1770_v24 = vmul.f32 0.03125, %v1769_v23 }
0x16f1   :  { %v1774_v28 = vpop.xlane.xlu1 %1773 }
0x16f2   :  { %v1776_v29 = vmul.f32 %v1770_v24, %v1770_v24  ;;  %v1775_v31 = vmul.f32 0.03125, %v1774_v28  ;;  %v1778_v39 = vsub.f32 %v1764_v15, %v1770_v24  ;;  %v1918_v15 = vld [vmem:[#allocation3 + $0x578] sm:$0xff] }
0x16f3   :  { %v3287_v17 = vpack.c.bf16 %v1919_v51, %v1918_v15 }
0x16f4   :  { %v1777_v32 = vsub.f32 %v1775_v31, %v1776_v29 }
0x16f6   :  { %v1779_v34 = vadd.f32 1e-05, %v1777_v32 }
0x16f8   :  { %3397 = vrsqrt.f32 %v1779_v34 }
0x1702   :  { %v3398_v44 = vpop.eup %3397 }
0x1703   :  { %v1781_v6 = vmul.f32 %v3398_v44, %v1778_v39 }
0x1705   :  { %v1786_v11 = vmul.f32 %v3910_v4, %v1781_v6 }
0x1707   :  { %v1791_v14 = vadd.f32 %v3915_v8, %v1786_v11 }
0x1709   :  { %v1793_v16 = vrot.slane %v1791_v14, 4 }
0x170b   :  { %v3919_v47 = vadd.f32 %v1793_v16, %v1761_v54  ;;  %v1917_v54 = vld [vmem:[#allocation3 + $0x570] sm:$0xff]  ;;  %v1922_v16 = vld [vmem:[#allocation3 + $0x598] sm:$0xff] }
0x170c   :  { %v3284_v13 = vpack.c.bf16 %v1917_v54, %v1916_v12 }
0x170d   :  { %v1796_v20 = vsel %vm1398_vm8, %v3919_v47, 0.0  ;;  %v1800_v48 = vmul.f32 %v3919_v47, %v3919_v47 }
0x170e   :  { %1797 = vadd.xlane.f32.xlu0 %v1796_v20  ;;  %3285 = vmatpush3.bf16.msra.mxu1 %v3284_v13  ;;  %v1923_v20 = vld [vmem:[#allocation3 + $0x5a0] sm:$0xff] }
0x170f   :  { %v1801_v43 = vsel %vm1398_vm8, %v1800_v48, 0.0  ;;  %3286 = vmatprep.subr.bf16.mxu1 %v3457_v18  ;;  %v3293_v48 = vpack.c.bf16 %v1923_v20, %v1922_v16 }
0x1710   :  { %1802 = vadd.xlane.f32.xlu1 %v1801_v43  ;;  %v2157_v43 = vld [vmem:[%s3981_s3 + $0x13] ss:$0 sm:$0xff] }
0x1712   :  { %3288 = vmatpush3.bf16.msra.mxu1 %v3287_v17 }
0x1713   :  { %3289 = vmatprep.subr.bf16.mxu1 %v3457_v18 }
0x1716   :  { %3291 = vmatpush3.bf16.msra.mxu1 %v3290_v55  ;;  %v2159_v55 = vld [vmem:[%s3981_s3 + $0x11] ss:$0 sm:$0xff] }
0x1717   :  { %3292 = vmatprep.subr.bf16.mxu1 %v3457_v18 }
0x171a   :  { %3294 = vmatpush3.bf16.msra.mxu1 %v3293_v48 }
0x179b   :  { %v1798_v22 = vpop.xlane.xlu0 %1797 }
0x179c   :  { %v1799_v23 = vmul.f32 0.03125, %v1798_v22 }
0x179d   :  { %v1803_v24 = vpop.xlane.xlu1 %1802 }
0x179e   :  { %v1805_v28 = vmul.f32 %v1799_v23, %v1799_v23  ;;  %v1804_v29 = vmul.f32 0.03125, %v1803_v24  ;;  %v1807_v34 = vsub.f32 %v3919_v47, %v1799_v23 }
0x17a0   :  { %v1806_v31 = vsub.f32 %v1804_v29, %v1805_v28 }
0x17a2   :  { %v1808_v32 = vadd.f32 1e-05, %v1806_v31 }
0x17a4   :  { %3399 = vrsqrt.f32 %v1808_v32 }
0x17ae   :  { %v3400_v39 = vpop.eup %3399 }
0x17af   :  { %v1810_v44 = vmul.f32 %v3400_v39, %v1807_v34 }
0x17b1   :  { %v1811_v6 = vmul.f32 %v3910_v4, %v1810_v44  ;;  %v2027_v4 = vld [vmem:[#allocation3 + $0x5a8] sm:$0xff] }
0x17b3   :  { %v1812_v11 = vadd.f32 %v3915_v8, %v1811_v6  ;;  %v2028_v8 = vld [vmem:[#allocation3 + $0x5b0] sm:$0xff] }
0x17b4   :  { %v3296_v52 = vpack.c.bf16 %v2028_v8, %v2027_v4 }
0x17b5   :  { %v1835_v14 = vrot.slane %v1812_v11, 4 }
0x17b7   :  { %2877 = vmatmul.mubr.f32.vlgmr.msra.gmra.mrb[16].mxu0 %v1835_v14 }
0x17b8   :  { %2946 = vmatprep.mubr.msk.f32.mxu0 %vm3458_vm0, %v3459_v25  ;;  %3297 = vmatpush3.bf16.msra.mxu0 %v3296_v52  ;;  %v3299_v25 = vpack.c.bf16 %v2030_v50, %v2029_v49 }
0x17b9   :  { %3298 = vmatprep.subr.bf16.mxu0 %v3457_v18 }
0x17bc   :  { %3300 = vmatpush3.bf16.msra.mxu0 %v3299_v25 }
0x17bd   :  { %3301 = vmatprep.subr.bf16.mxu0 %v3457_v18 }
0x17c0   :  { %3303 = vmatpush3.bf16.msra.mxu0 %v3302_v62 }
0x17c1   :  { %3304 = vmatprep.subr.bf16.mxu0 %v3457_v18 }
0x17c4   :  { %3306 = vmatpush3.bf16.msra.mxu0 %v3305_v1 }
0x17c5   :  { %3307 = vmatprep.subr.bf16.mxu0 %v3457_v18 }
0x17c8   :  { %3309 = vmatpush3.bf16.msra.mxu0 %v3308_v3 }
0x17c9   :  { %3310 = vmatprep.subr.bf16.mxu0 %v3457_v18 }
0x17cc   :  { %3312 = vmatpush3.bf16.msra.mxu0 %v3311_v26 }
0x17cd   :  { %3313 = vmatprep.subr.bf16.mxu0 %v3457_v18 }
0x17d0   :  { %3315 = vmatpush3.bf16.msra.mxu0 %v3314_v38 }
0x17d1   :  { %3316 = vmatprep.subr.bf16.mxu0 %v3457_v18  ;;  %v2160_v18 = vld [vmem:[%s3981_s3 + $0x12] ss:$0 sm:$0xff] }
0x17d4   :  { %3318 = vmatpush3.bf16.msra.mxu0 %v3317_v10 }
0x188a   :  { %v1903_v47 = vpop.f32.mrb[16].mxu0 }
0x188b   :  { %v1904_v45 = vadd.f32 %v2157_v43, %v1903_v47  ;;  %v2878_v35 = vpop.f32.mrb[17].mxu0 }
0x188d   :  { %v1907_v37 = vmax.f32 %v1904_v45, 0.0 }
0x188f   :  { %2912 = vmatmul.mubr.f32.vlgmr.msra.gmra.mrb[16].mxu1 %v1907_v37 }
0x1962   :  { %v1995_v30 = vpop.f32.mrb[16].mxu1 }
0x1963   :  { %v1996_v27 = vadd.f32 %v2158_v53, %v1995_v30  ;;  %v2913_v58 = vpop.f32.mrb[17].mxu1 }
0x1965   :  { %v1999_v56 = vadd.f32 %v1996_v27, %v1835_v14 }
0x1967   :  { %v2002_v40 = vsel %vm37_vm4, %v1999_v56, 0.0  ;;  %v2006_v57 = vmul.f32 %v1999_v56, %v1999_v56 }
0x1968   :  { %2003 = vadd.xlane.f32.xlu0 %v2002_v40 }
0x1969   :  { %v2007_v59 = vsel %vm37_vm4, %v2006_v57, 0.0 }
0x196a   :  { %2008 = vadd.xlane.f32.xlu1 %v2007_v59 }
0x19f5   :  { %v2004_v46 = vpop.xlane.xlu0 %2003 }
0x19f6   :  { %v2005_v12 = vmul.f32 0.03125, %v2004_v46 }
0x19f7   :  { %v2009_v54 = vpop.xlane.xlu1 %2008 }
0x19f8   :  { %v2011_v13 = vmul.f32 %v2005_v12, %v2005_v12  ;;  %v2010_v15 = vmul.f32 0.03125, %v2009_v54  ;;  %v2013_v19 = vsub.f32 %v1999_v56, %v2005_v12 }
0x19fa   :  { %v2012_v51 = vsub.f32 %v2010_v15, %v2011_v13 }
0x19fc   :  { %v2014_v17 = vadd.f32 1e-05, %v2012_v51 }
0x19fe   :  { %3401 = vrsqrt.f32 %v2014_v17 }
0x1a08   :  { %v3402_v21 = vpop.eup %3401 }
0x1a09   :  { %v2016_v22 = vmul.f32 %v3402_v21, %v2013_v19 }
0x1a0b   :  { %v2021_v23 = vmul.f32 %v2159_v55, %v2016_v22 }
0x1a0d   :  { %v2026_v24 = vadd.f32 %v2160_v18, %v2021_v23 }
0x1a0f   :  { %2947 = vmatmul.mubr.f32.vlgmr.msra.gmra.mrb[18].mxu0 %v2026_v24 }
0x1ae2   :  { %v2109_v28 = vpop.f32.mrb[18].mxu0 }
0x1ae3   :  { %v2113_v29 = vmax.f32 %v2109_v28, 0.0  ;;  %v2948_v31 = vpop.f32.mrb[19].mxu0 }
0x1ae5   :  { %2114 = vst [vmem:[#allocation6] sm:$0xf] %v2113_v29 }
0x1ae6   :  { %3436 = shalt.err (!%p3433_p12)
}
0x1ae7   :  { %s3437_s3 = scalar_lea.hbm %s3982_s4, 64 }
0x1ae8   :  { %p3438_p13 = scmp.ne.s32.totalorder %s3982_s4, %s3437_s3  ;;  %p3441_p0 = scmp.lt.u32.totalorder %s3437_s3, %s3982_s4 }
0x1aea   :  { %p3443_p1 = pnand %p3441_p0, %p3438_p13 }
0x1aec   :  { %3446 = shalt.err (!%p3443_p1)
}
0x1aed   :  { %2124 = dma.vmem_to_hbm [thread:$0]  %s2122_s5, 64, %s3982_s4, [#allocation5]  }
0x1aee   :  { %3449 = dma.done.wait [#allocation5], 64  }
0x1aef   :  { %3450 = vsyncadd [#allocation5], 4294967232 }
0x1af0   :  { %2128 = vsyncpa [#allocation4], 1 }
0x1af1   :  { %2129 = vsyncpa [#allocation5], 1 }

</bundles_post_ra>
